<compile_context>
chip_gen: v7x
topology: tpu7x:2x2x1
jax: 0.10.0
libtpu: 0.0.40
codegen_flags: <defaults>
</compile_context>

<pallas_src>
import functools
import numpy as np
import jax
import jax.numpy as jnp
from jax.experimental import pallas as pl
from jax.experimental.pallas import tpu as pltpu


def _fused_kernel(
    # inputs
    x_ref, w1_ref, b1_ref, w2_ref, b2_ref, w3_ref, b3_ref, w4_ref, b4_ref,
    wfc_ref, bfc_ref, wout_ref, bout_ref,
    # output
    o_ref,
    # scratch
    p1, y1, p2, y2, p3, y3, p4, y4, fbuf,
    *, L):
    L2, L3, L4, L5 = L // 2, L // 4, L // 8, L // 16

    # ---------------- conv1: Cin=1, K=9, dilation=2, 'same' ----------------
    K1, D1 = 9, 2
    PAD1 = D1 * (K1 - 1) // 2                          # 8
    p1[...] = jnp.zeros_like(p1)
    p1[pl.ds(PAD1, L), :] = x_ref[...]                 # centered, zero-padded input
    acc = jnp.zeros((L, 16), jnp.float32)
    for k in range(K1):                                # Cin==1: broadcast MAC on VPU
        col = p1[pl.ds(k * D1, L), :]                  # contiguous (L,1) load per tap
        acc = acc + col * w1_ref[pl.ds(k, 1), :]       # (L,1)*(1,16) outer-product bcast
    y1[...] = jnp.maximum(acc + b1_ref[...], 0.0)
    a = jnp.maximum(y1[pl.ds(0, L2, 2), :],            # MaxPool1d(2,2): one even/odd
                    y1[pl.ds(1, L2, 2), :])            # strided max per layer

    # -------- conv2..conv4: im2col slab -> single MXU matmul per layer --------
    def conv_relu_pool(act, pbuf, ybuf, w_ref, b_ref):
        Lc, Cin = act.shape
        K, PAD = 7, 3
        pbuf[...] = jnp.zeros_like(pbuf)
        pbuf[pl.ds(PAD, Lc), :] = act                  # 'same' padding in VMEM
        # (Lc, K*Cin) slab from K contiguous shifted views; one dot per layer.
        slab = jnp.concatenate([pbuf[pl.ds(k, Lc), :] for k in range(K)], axis=1)
        y = jnp.dot(slab, w_ref[...], preferred_element_type=jnp.float32) + b_ref[...]
        ybuf[...] = jnp.maximum(y, 0.0)
        return jnp.maximum(ybuf[pl.ds(0, Lc // 2, 2), :],
                           ybuf[pl.ds(1, Lc // 2, 2), :])

    a = conv_relu_pool(a, p2, y2, w2_ref, b2_ref)      # (L3, 32)
    a = conv_relu_pool(a, p3, y3, w3_ref, b3_ref)      # (L4, 64)
    a = conv_relu_pool(a, p4, y4, w4_ref, b4_ref)      # (L5, 128)

    # ---------------- flatten + FC head ----------------
    fbuf[...] = a                                      # (L5, 128) pooled conv4 output
    # position-major flatten (l*128 + c); torch's channel-major order is absorbed
    # into the wfc row layout at parameter-prep time.
    feat = jnp.concatenate([fbuf[pl.ds(l, 1), :] for l in range(L5)], axis=1)  # (1, 128*L5)
    h = jnp.dot(feat, wfc_ref[...], preferred_element_type=jnp.float32) + bfc_ref[...]
    h = jnp.maximum(h, 0.0)
    # TODO(synk): training-mode Dropout(0.5) not implemented; matches module.eval().
    o_ref[...] = jnp.dot(h, wout_ref[...], preferred_element_type=jnp.float32) + bout_ref[...]


def spectral_cnn_forward(x_ncw, params):
    """x_ncw: (B, 1, L) float32 (PyTorch NCW). Returns (B, 6) logits."""
    B, C, L = x_ncw.shape
    assert C == 1 and L % 16 == 0
    L2, L3, L4, L5 = L // 2, L // 4, L // 8, L // 16
    F = 128 * L5                                       # == torch self._to_linear

    x = x_ncw.reshape(B, L, 1)  # free: channel dim is 1, so NCW->NLC is a pure reshape

    kernel = functools.partial(_fused_kernel, L=L)

    def full(shape):
        return pl.BlockSpec(shape, lambda b, _s=shape: (0,) * len(_s))

    out3 = pl.pallas_call(
        kernel,
        out_shape=jax.ShapeDtypeStruct((B, 1, 6), jnp.float32),
        grid=(B,),
        in_specs=[
            pl.BlockSpec((None, L, 1), lambda b: (b, 0, 0)),   # one sample per grid step
            full((9, 16)), full((1, 16)),                      # conv1  (K*Cin, Cout)
            full((7 * 16, 32)), full((1, 32)),                 # conv2
            full((7 * 32, 64)), full((1, 64)),                 # conv3
            full((7 * 64, 128)), full((1, 128)),               # conv4
            full((F, 32)), full((1, 32)),                      # fc
            full((32, 6)), full((1, 6)),                       # output
        ],
        out_specs=pl.BlockSpec((None, 1, 6), lambda b: (b, 0, 0)),
        scratch_shapes=[
            pltpu.VMEM((L + 16, 1), jnp.float32),    # p1: padded conv1 input
            pltpu.VMEM((L, 16), jnp.float32),        # y1: conv1+relu output
            pltpu.VMEM((L2 + 6, 16), jnp.float32),   # p2
            pltpu.VMEM((L2, 32), jnp.float32),       # y2
            pltpu.VMEM((L3 + 6, 32), jnp.float32),   # p3
            pltpu.VMEM((L3, 64), jnp.float32),       # y3
            pltpu.VMEM((L4 + 6, 64), jnp.float32),   # p4
            pltpu.VMEM((L4, 128), jnp.float32),      # y4
            pltpu.VMEM((L5, 128), jnp.float32),      # fbuf: pooled conv4 (flatten source)
        ],
        compiler_params=pltpu.CompilerParams(
            dimension_semantics=("parallel",)),      # batch-parallel: uses both TCs on v7x
    )(x, params["w1"], params["b1"], params["w2"], params["b2"],
      params["w3"], params["b3"], params["w4"], params["b4"],
      params["wfc"], params["bfc"], params["wout"], params["bout"])
    return out3.reshape(B, 6)


def init_conv_im2col(key, K, Cin, Cout):
    # PyTorch default Conv1d init: U(-s, s), s = 1/sqrt(Cin*K).
    # Layout is im2col-ready: row index = k*Cin + ci.  To load real torch weights
    # (Cout, Cin, K): w_pallas = w_torch.transpose(2, 1, 0).reshape(K*Cin, Cout)
    # -> wait, that gives (K, Cin, Cout) row order (k, ci) as required.
    kw, kb = jax.random.split(key)
    s = 1.0 / np.sqrt(Cin * K)
    w = jax.random.uniform(kw, (K * Cin, Cout), jnp.float32, -s, s)
    b = jax.random.uniform(kb, (1, Cout), jnp.float32, -s, s)
    return w, b


def init_linear_fc(key, fan_in, fan_out):
    # PyTorch default Linear init: U(-1/sqrt(fan_in), +1/sqrt(fan_in)).
    # Row order for the fc layer (fan_in = 128*L5): our kernel flattens position-major
    # (row = l*128 + c) while torch's x.view(B,-1) is channel-major (c*L5 + l).  To load
    # real torch fc.weight (32, 512):
    #   wfc = fc_w.T.reshape(128, L5, 32).transpose(1, 0, 2).reshape(128*L5, 32)
    kw, kb = jax.random.split(key)
    s = 1.0 / np.sqrt(fan_in)
    w = jax.random.uniform(kw, (fan_in, fan_out), jnp.float32, -s, s)
    b = jax.random.uniform(kb, (1, fan_out), jnp.float32, -s, s)
    return w, b


if __name__ == "__main__":
    B = 2
    input_dim = 64  # divisible by 16 so the 4 maxpools are clean: 64->32->16->8->4

    key = jax.random.PRNGKey(0)
    k_in, k1, k2, k3, k4, kfc, kout = jax.random.split(key, 7)

    params = {}
    params["w1"], params["b1"] = init_conv_im2col(k1, 9, 1, 16)
    params["w2"], params["b2"] = init_conv_im2col(k2, 7, 16, 32)
    params["w3"], params["b3"] = init_conv_im2col(k3, 7, 32, 64)
    params["w4"], params["b4"] = init_conv_im2col(k4, 7, 64, 128)
    to_linear = 128 * (input_dim // 16)  # == self._to_linear == 512
    params["wfc"], params["bfc"] = init_linear_fc(kfc, to_linear, 32)
    params["wout"], params["bout"] = init_linear_fc(kout, 32, 6)

    x = jax.random.normal(k_in, (B, 1, input_dim), dtype=jnp.float32)  # NCW like PyTorch

    fwd = jax.jit(spectral_cnn_forward)
    out = fwd(x, params)
    out = jax.block_until_ready(out)

    assert out.shape == (B, 6), out.shape
    assert bool(jnp.all(jnp.isfinite(out)))
    print("KERNEL_OK")
</pallas_src>

<mosaic_0001>
module attributes {stable_mosaic.version = 11 : i64} {
  func.func @_fused_kernel(%arg0: i32, %arg1: memref<1x64x1xf32, #tpu.memory_space<vmem>>, %arg2: memref<9x16xf32, #tpu.memory_space<vmem>>, %arg3: memref<1x16xf32, #tpu.memory_space<vmem>>, %arg4: memref<112x32xf32, #tpu.memory_space<vmem>>, %arg5: memref<1x32xf32, #tpu.memory_space<vmem>>, %arg6: memref<224x64xf32, #tpu.memory_space<vmem>>, %arg7: memref<1x64xf32, #tpu.memory_space<vmem>>, %arg8: memref<448x128xf32, #tpu.memory_space<vmem>>, %arg9: memref<1x128xf32, #tpu.memory_space<vmem>>, %arg10: memref<512x32xf32, #tpu.memory_space<vmem>>, %arg11: memref<1x32xf32, #tpu.memory_space<vmem>>, %arg12: memref<32x6xf32, #tpu.memory_space<vmem>>, %arg13: memref<1x6xf32, #tpu.memory_space<vmem>>, %arg14: memref<1x1x6xf32, #tpu.memory_space<vmem>>, %arg15: memref<80x1xf32, #tpu.memory_space<vmem>>, %arg16: memref<64x16xf32, #tpu.memory_space<vmem>>, %arg17: memref<38x16xf32, #tpu.memory_space<vmem>>, %arg18: memref<32x32xf32, #tpu.memory_space<vmem>>, %arg19: memref<22x32xf32, #tpu.memory_space<vmem>>, %arg20: memref<16x64xf32, #tpu.memory_space<vmem>>, %arg21: memref<14x64xf32, #tpu.memory_space<vmem>>, %arg22: memref<8x128xf32, #tpu.memory_space<vmem>>, %arg23: memref<4x128xf32, #tpu.memory_space<vmem>>) attributes {dimension_semantics = [#tpu.dimension_semantics<parallel>], iteration_bounds = array<i64: 2>, scalar_prefetch = 0 : i64, scratch_operands = 9 : i64, tpu.core_type = #tpu.core_type<tc>, window_params = [{transform_indices = @transform_0, window_bounds = array<i64: 1, 64, 1>}, {pipeline_mode = #tpu.pipeline_mode<synchronous>, transform_indices = @transform_1, window_bounds = array<i64: 9, 16>}, {pipeline_mode = #tpu.pipeline_mode<synchronous>, transform_indices = @transform_2, window_bounds = array<i64: 1, 16>}, {pipeline_mode = #tpu.pipeline_mode<synchronous>, transform_indices = @transform_3, window_bounds = array<i64: 112, 32>}, {pipeline_mode = #tpu.pipeline_mode<synchronous>, transform_indices = @transform_4, window_bounds = array<i64: 1, 32>}, {pipeline_mode = #tpu.pipeline_mode<synchronous>, transform_indices = @transform_5, window_bounds = array<i64: 224, 64>}, {pipeline_mode = #tpu.pipeline_mode<synchronous>, transform_indices = @transform_6, window_bounds = array<i64: 1, 64>}, {pipeline_mode = #tpu.pipeline_mode<synchronous>, transform_indices = @transform_7, window_bounds = array<i64: 448, 128>}, {pipeline_mode = #tpu.pipeline_mode<synchronous>, transform_indices = @transform_8, window_bounds = array<i64: 1, 128>}, {pipeline_mode = #tpu.pipeline_mode<synchronous>, transform_indices = @transform_9, window_bounds = array<i64: 512, 32>}, {pipeline_mode = #tpu.pipeline_mode<synchronous>, transform_indices = @transform_10, window_bounds = array<i64: 1, 32>}, {pipeline_mode = #tpu.pipeline_mode<synchronous>, transform_indices = @transform_11, window_bounds = array<i64: 32, 6>}, {pipeline_mode = #tpu.pipeline_mode<synchronous>, transform_indices = @transform_12, window_bounds = array<i64: 1, 6>}, {transform_indices = @transform_13, window_bounds = array<i64: 1, 1, 6>}]} {
    %cst = arith.constant 0.000000e+00 : f32
    %0 = vector.broadcast %cst : f32 to vector<80x1xf32>
    %c0 = arith.constant 0 : index
    %c0_0 = arith.constant 0 : index
    %1 = vector.load %arg15[%c0, %c0_0] : memref<80x1xf32, #tpu.memory_space<vmem>>, vector<80x1xf32>
    tpu.vector_store %arg15[%c0, %c0_0], %0 {strides = array<i32>} : memref<80x1xf32, #tpu.memory_space<vmem>>, vector<80x1xf32>,
    %c0_1 = arith.constant 0 : index
    %c0_2 = arith.constant 0 : index
    %c0_3 = arith.constant 0 : index
    %2 = vector.load %arg1[%c0_1, %c0_2, %c0_3] : memref<1x64x1xf32, #tpu.memory_space<vmem>>, vector<1x64x1xf32>
    %3 = vector.shape_cast %2 : vector<1x64x1xf32> to vector<64x1xf32>
    %c8 = arith.constant 8 : index
    %c0_4 = arith.constant 0 : index
    %4 = vector.load %arg15[%c8, %c0_4] : memref<80x1xf32, #tpu.memory_space<vmem>>, vector<64x1xf32>
    tpu.vector_store %arg15[%c8, %c0_4], %3 {strides = array<i32>} : memref<80x1xf32, #tpu.memory_space<vmem>>, vector<64x1xf32>,
    %cst_5 = arith.constant 0.000000e+00 : f32
    %5 = vector.broadcast %cst_5 : f32 to vector<64x16xf32>
    %c0_6 = arith.constant 0 : index
    %c0_7 = arith.constant 0 : index
    %6 = vector.load %arg15[%c0_6, %c0_7] : memref<80x1xf32, #tpu.memory_space<vmem>>, vector<64x1xf32>
    %c0_8 = arith.constant 0 : index
    %c0_9 = arith.constant 0 : index
    %7 = vector.load %arg2[%c0_8, %c0_9] : memref<9x16xf32, #tpu.memory_space<vmem>>, vector<1x16xf32>
    %8 = vector.broadcast %6 : vector<64x1xf32> to vector<64x16xf32>
    %9 = vector.broadcast %7 : vector<1x16xf32> to vector<64x16xf32>
    %10 = arith.mulf %8, %9 : vector<64x16xf32>
    %11 = arith.addf %5, %10 : vector<64x16xf32>
    %c2 = arith.constant 2 : index
    %c0_10 = arith.constant 0 : index
    %12 = vector.load %arg15[%c2, %c0_10] : memref<80x1xf32, #tpu.memory_space<vmem>>, vector<64x1xf32>
    %c1 = arith.constant 1 : index
    %c0_11 = arith.constant 0 : index
    %13 = vector.load %arg2[%c1, %c0_11] : memref<9x16xf32, #tpu.memory_space<vmem>>, vector<1x16xf32>
    %14 = vector.broadcast %12 : vector<64x1xf32> to vector<64x16xf32>
    %15 = vector.broadcast %13 : vector<1x16xf32> to vector<64x16xf32>
    %16 = arith.mulf %14, %15 : vector<64x16xf32>
    %17 = arith.addf %11, %16 : vector<64x16xf32>
    %c4 = arith.constant 4 : index
    %c0_12 = arith.constant 0 : index
    %18 = vector.load %arg15[%c4, %c0_12] : memref<80x1xf32, #tpu.memory_space<vmem>>, vector<64x1xf32>
    %c2_13 = arith.constant 2 : index
    %c0_14 = arith.constant 0 : index
    %19 = vector.load %arg2[%c2_13, %c0_14] : memref<9x16xf32, #tpu.memory_space<vmem>>, vector<1x16xf32>
    %20 = vector.broadcast %18 : vector<64x1xf32> to vector<64x16xf32>
    %21 = vector.broadcast %19 : vector<1x16xf32> to vector<64x16xf32>
    %22 = arith.mulf %20, %21 : vector<64x16xf32>
    %23 = arith.addf %17, %22 : vector<64x16xf32>
    %c6 = arith.constant 6 : index
    %c0_15 = arith.constant 0 : index
    %24 = vector.load %arg15[%c6, %c0_15] : memref<80x1xf32, #tpu.memory_space<vmem>>, vector<64x1xf32>
    %c3 = arith.constant 3 : index
    %c0_16 = arith.constant 0 : index
    %25 = vector.load %arg2[%c3, %c0_16] : memref<9x16xf32, #tpu.memory_space<vmem>>, vector<1x16xf32>
    %26 = vector.broadcast %24 : vector<64x1xf32> to vector<64x16xf32>
    %27 = vector.broadcast %25 : vector<1x16xf32> to vector<64x16xf32>
    %28 = arith.mulf %26, %27 : vector<64x16xf32>
    %29 = arith.addf %23, %28 : vector<64x16xf32>
    %c8_17 = arith.constant 8 : index
    %c0_18 = arith.constant 0 : index
    %30 = vector.load %arg15[%c8_17, %c0_18] : memref<80x1xf32, #tpu.memory_space<vmem>>, vector<64x1xf32>
    %c4_19 = arith.constant 4 : index
    %c0_20 = arith.constant 0 : index
    %31 = vector.load %arg2[%c4_19, %c0_20] : memref<9x16xf32, #tpu.memory_space<vmem>>, vector<1x16xf32>
    %32 = vector.broadcast %30 : vector<64x1xf32> to vector<64x16xf32>
    %33 = vector.broadcast %31 : vector<1x16xf32> to vector<64x16xf32>
    %34 = arith.mulf %32, %33 : vector<64x16xf32>
    %35 = arith.addf %29, %34 : vector<64x16xf32>
    %c10 = arith.constant 10 : index
    %c0_21 = arith.constant 0 : index
    %36 = vector.load %arg15[%c10, %c0_21] : memref<80x1xf32, #tpu.memory_space<vmem>>, vector<64x1xf32>
    %c5 = arith.constant 5 : index
    %c0_22 = arith.constant 0 : index
    %37 = vector.load %arg2[%c5, %c0_22] : memref<9x16xf32, #tpu.memory_space<vmem>>, vector<1x16xf32>
    %38 = vector.broadcast %36 : vector<64x1xf32> to vector<64x16xf32>
    %39 = vector.broadcast %37 : vector<1x16xf32> to vector<64x16xf32>
    %40 = arith.mulf %38, %39 : vector<64x16xf32>
    %41 = arith.addf %35, %40 : vector<64x16xf32>
    %c12 = arith.constant 12 : index
    %c0_23 = arith.constant 0 : index
    %42 = vector.load %arg15[%c12, %c0_23] : memref<80x1xf32, #tpu.memory_space<vmem>>, vector<64x1xf32>
    %c6_24 = arith.constant 6 : index
    %c0_25 = arith.constant 0 : index
    %43 = vector.load %arg2[%c6_24, %c0_25] : memref<9x16xf32, #tpu.memory_space<vmem>>, vector<1x16xf32>
    %44 = vector.broadcast %42 : vector<64x1xf32> to vector<64x16xf32>
    %45 = vector.broadcast %43 : vector<1x16xf32> to vector<64x16xf32>
    %46 = arith.mulf %44, %45 : vector<64x16xf32>
    %47 = arith.addf %41, %46 : vector<64x16xf32>
    %c14 = arith.constant 14 : index
    %c0_26 = arith.constant 0 : index
    %48 = vector.load %arg15[%c14, %c0_26] : memref<80x1xf32, #tpu.memory_space<vmem>>, vector<64x1xf32>
    %c7 = arith.constant 7 : index
    %c0_27 = arith.constant 0 : index
    %49 = vector.load %arg2[%c7, %c0_27] : memref<9x16xf32, #tpu.memory_space<vmem>>, vector<1x16xf32>
    %50 = vector.broadcast %48 : vector<64x1xf32> to vector<64x16xf32>
    %51 = vector.broadcast %49 : vector<1x16xf32> to vector<64x16xf32>
    %52 = arith.mulf %50, %51 : vector<64x16xf32>
    %53 = arith.addf %47, %52 : vector<64x16xf32>
    %c16 = arith.constant 16 : index
    %c0_28 = arith.constant 0 : index
    %54 = vector.load %arg15[%c16, %c0_28] : memref<80x1xf32, #tpu.memory_space<vmem>>, vector<64x1xf32>
    %c8_29 = arith.constant 8 : index
    %c0_30 = arith.constant 0 : index
    %55 = vector.load %arg2[%c8_29, %c0_30] : memref<9x16xf32, #tpu.memory_space<vmem>>, vector<1x16xf32>
    %56 = vector.broadcast %54 : vector<64x1xf32> to vector<64x16xf32>
    %57 = vector.broadcast %55 : vector<1x16xf32> to vector<64x16xf32>
    %58 = arith.mulf %56, %57 : vector<64x16xf32>
    %59 = arith.addf %53, %58 : vector<64x16xf32>
    %c0_31 = arith.constant 0 : index
    %c0_32 = arith.constant 0 : index
    %60 = vector.load %arg3[%c0_31, %c0_32] : memref<1x16xf32, #tpu.memory_space<vmem>>, vector<1x16xf32>
    %61 = vector.broadcast %60 : vector<1x16xf32> to vector<64x16xf32>
    %62 = arith.addf %59, %61 : vector<64x16xf32>
    %cst_33 = arith.constant 0.000000e+00 : f32
    %63 = vector.broadcast %cst_33 : f32 to vector<64x16xf32>
    %64 = arith.maximumf %62, %63 : vector<64x16xf32>
    %c0_34 = arith.constant 0 : index
    %c0_35 = arith.constant 0 : index
    %65 = vector.load %arg16[%c0_34, %c0_35] : memref<64x16xf32, #tpu.memory_space<vmem>>, vector<64x16xf32>
    tpu.vector_store %arg16[%c0_34, %c0_35], %64 {strides = array<i32>} : memref<64x16xf32, #tpu.memory_space<vmem>>, vector<64x16xf32>,
    %c0_36 = arith.constant 0 : index
    %c0_37 = arith.constant 0 : index
    %66 = tpu.strided_load %arg16[%c0_36, %c0_37] {strides = array<i32: 2, 1>} : memref<64x16xf32, #tpu.memory_space<vmem>>, vector<32x16xf32>
    %c1_38 = arith.constant 1 : index
    %c0_39 = arith.constant 0 : index
    %67 = tpu.strided_load %arg16[%c1_38, %c0_39] {strides = array<i32: 2, 1>} : memref<64x16xf32, #tpu.memory_space<vmem>>, vector<32x16xf32>
    %68 = arith.maximumf %66, %67 : vector<32x16xf32>
    %cst_40 = arith.constant 0.000000e+00 : f32
    %69 = vector.broadcast %cst_40 : f32 to vector<38x16xf32>
    %c0_41 = arith.constant 0 : index
    %c0_42 = arith.constant 0 : index
    %70 = vector.load %arg17[%c0_41, %c0_42] : memref<38x16xf32, #tpu.memory_space<vmem>>, vector<38x16xf32>
    tpu.vector_store %arg17[%c0_41, %c0_42], %69 {strides = array<i32>} : memref<38x16xf32, #tpu.memory_space<vmem>>, vector<38x16xf32>,
    %c3_43 = arith.constant 3 : index
    %c0_44 = arith.constant 0 : index
    %71 = vector.load %arg17[%c3_43, %c0_44] : memref<38x16xf32, #tpu.memory_space<vmem>>, vector<32x16xf32>
    tpu.vector_store %arg17[%c3_43, %c0_44], %68 {strides = array<i32>} : memref<38x16xf32, #tpu.memory_space<vmem>>, vector<32x16xf32>,
    %c0_45 = arith.constant 0 : index
    %c0_46 = arith.constant 0 : index
    %72 = vector.load %arg17[%c0_45, %c0_46] : memref<38x16xf32, #tpu.memory_space<vmem>>, vector<32x16xf32>
    %c1_47 = arith.constant 1 : index
    %c0_48 = arith.constant 0 : index
    %73 = vector.load %arg17[%c1_47, %c0_48] : memref<38x16xf32, #tpu.memory_space<vmem>>, vector<32x16xf32>
    %c2_49 = arith.constant 2 : index
    %c0_50 = arith.constant 0 : index
    %74 = vector.load %arg17[%c2_49, %c0_50] : memref<38x16xf32, #tpu.memory_space<vmem>>, vector<32x16xf32>
    %c3_51 = arith.constant 3 : index
    %c0_52 = arith.constant 0 : index
    %75 = vector.load %arg17[%c3_51, %c0_52] : memref<38x16xf32, #tpu.memory_space<vmem>>, vector<32x16xf32>
    %c4_53 = arith.constant 4 : index
    %c0_54 = arith.constant 0 : index
    %76 = vector.load %arg17[%c4_53, %c0_54] : memref<38x16xf32, #tpu.memory_space<vmem>>, vector<32x16xf32>
    %c5_55 = arith.constant 5 : index
    %c0_56 = arith.constant 0 : index
    %77 = vector.load %arg17[%c5_55, %c0_56] : memref<38x16xf32, #tpu.memory_space<vmem>>, vector<32x16xf32>
    %c6_57 = arith.constant 6 : index
    %c0_58 = arith.constant 0 : index
    %78 = vector.load %arg17[%c6_57, %c0_58] : memref<38x16xf32, #tpu.memory_space<vmem>>, vector<32x16xf32>
    %79 = tpu.concatenate %72, %73, %74, %75, %76, %77, %78 in 1 : vector<32x16xf32>, vector<32x16xf32>, vector<32x16xf32>, vector<32x16xf32>, vector<32x16xf32>, vector<32x16xf32>, vector<32x16xf32> -> vector<32x112xf32>
    %c0_59 = arith.constant 0 : index
    %c0_60 = arith.constant 0 : index
    %80 = vector.load %arg4[%c0_59, %c0_60] : memref<112x32xf32, #tpu.memory_space<vmem>>, vector<112x32xf32>
    %cst_61 = arith.constant dense<0.000000e+00> : vector<32x32xf32>
    %81 = tpu.matmul %79, %80, %cst_61 {dimension_numbers = #tpu.dot_dimension_numbers<[1], [0], [0], [1], [0, 0, 1, 1], [], []>} : vector<32x112xf32>, vector<112x32xf32>, vector<32x32xf32> -> vector<32x32xf32>
    %c0_62 = arith.constant 0 : index
    %c0_63 = arith.constant 0 : index
    %82 = vector.load %arg5[%c0_62, %c0_63] : memref<1x32xf32, #tpu.memory_space<vmem>>, vector<1x32xf32>
    %83 = vector.broadcast %82 : vector<1x32xf32> to vector<32x32xf32>
    %84 = arith.addf %81, %83 : vector<32x32xf32>
    %cst_64 = arith.constant 0.000000e+00 : f32
    %85 = vector.broadcast %cst_64 : f32 to vector<32x32xf32>
    %86 = arith.maximumf %84, %85 : vector<32x32xf32>
    %c0_65 = arith.constant 0 : index
    %c0_66 = arith.constant 0 : index
    %87 = vector.load %arg18[%c0_65, %c0_66] : memref<32x32xf32, #tpu.memory_space<vmem>>, vector<32x32xf32>
    tpu.vector_store %arg18[%c0_65, %c0_66], %86 {strides = array<i32>} : memref<32x32xf32, #tpu.memory_space<vmem>>, vector<32x32xf32>,
    %c0_67 = arith.constant 0 : index
    %c0_68 = arith.constant 0 : index
    %88 = tpu.strided_load %arg18[%c0_67, %c0_68] {strides = array<i32: 2, 1>} : memref<32x32xf32, #tpu.memory_space<vmem>>, vector<16x32xf32>
    %c1_69 = arith.constant 1 : index
    %c0_70 = arith.constant 0 : index
    %89 = tpu.strided_load %arg18[%c1_69, %c0_70] {strides = array<i32: 2, 1>} : memref<32x32xf32, #tpu.memory_space<vmem>>, vector<16x32xf32>
    %90 = arith.maximumf %88, %89 : vector<16x32xf32>
    %cst_71 = arith.constant 0.000000e+00 : f32
    %91 = vector.broadcast %cst_71 : f32 to vector<22x32xf32>
    %c0_72 = arith.constant 0 : index
    %c0_73 = arith.constant 0 : index
    %92 = vector.load %arg19[%c0_72, %c0_73] : memref<22x32xf32, #tpu.memory_space<vmem>>, vector<22x32xf32>
    tpu.vector_store %arg19[%c0_72, %c0_73], %91 {strides = array<i32>} : memref<22x32xf32, #tpu.memory_space<vmem>>, vector<22x32xf32>,
    %c3_74 = arith.constant 3 : index
    %c0_75 = arith.constant 0 : index
    %93 = vector.load %arg19[%c3_74, %c0_75] : memref<22x32xf32, #tpu.memory_space<vmem>>, vector<16x32xf32>
    tpu.vector_store %arg19[%c3_74, %c0_75], %90 {strides = array<i32>} : memref<22x32xf32, #tpu.memory_space<vmem>>, vector<16x32xf32>,
    %c0_76 = arith.constant 0 : index
    %c0_77 = arith.constant 0 : index
    %94 = vector.load %arg19[%c0_76, %c0_77] : memref<22x32xf32, #tpu.memory_space<vmem>>, vector<16x32xf32>
    %c1_78 = arith.constant 1 : index
    %c0_79 = arith.constant 0 : index
    %95 = vector.load %arg19[%c1_78, %c0_79] : memref<22x32xf32, #tpu.memory_space<vmem>>, vector<16x32xf32>
    %c2_80 = arith.constant 2 : index
    %c0_81 = arith.constant 0 : index
    %96 = vector.load %arg19[%c2_80, %c0_81] : memref<22x32xf32, #tpu.memory_space<vmem>>, vector<16x32xf32>
    %c3_82 = arith.constant 3 : index
    %c0_83 = arith.constant 0 : index
    %97 = vector.load %arg19[%c3_82, %c0_83] : memref<22x32xf32, #tpu.memory_space<vmem>>, vector<16x32xf32>
    %c4_84 = arith.constant 4 : index
    %c0_85 = arith.constant 0 : index
    %98 = vector.load %arg19[%c4_84, %c0_85] : memref<22x32xf32, #tpu.memory_space<vmem>>, vector<16x32xf32>
    %c5_86 = arith.constant 5 : index
    %c0_87 = arith.constant 0 : index
    %99 = vector.load %arg19[%c5_86, %c0_87] : memref<22x32xf32, #tpu.memory_space<vmem>>, vector<16x32xf32>
    %c6_88 = arith.constant 6 : index
    %c0_89 = arith.constant 0 : index
    %100 = vector.load %arg19[%c6_88, %c0_89] : memref<22x32xf32, #tpu.memory_space<vmem>>, vector<16x32xf32>
    %101 = tpu.concatenate %94, %95, %96, %97, %98, %99, %100 in 1 : vector<16x32xf32>, vector<16x32xf32>, vector<16x32xf32>, vector<16x32xf32>, vector<16x32xf32>, vector<16x32xf32>, vector<16x32xf32> -> vector<16x224xf32>
    %c0_90 = arith.constant 0 : index
    %c0_91 = arith.constant 0 : index
    %102 = vector.load %arg6[%c0_90, %c0_91] : memref<224x64xf32, #tpu.memory_space<vmem>>, vector<224x64xf32>
    %cst_92 = arith.constant dense<0.000000e+00> : vector<16x64xf32>
    %103 = tpu.matmul %101, %102, %cst_92 {dimension_numbers = #tpu.dot_dimension_numbers<[1], [0], [0], [1], [0, 0, 1, 1], [], []>} : vector<16x224xf32>, vector<224x64xf32>, vector<16x64xf32> -> vector<16x64xf32>
    %c0_93 = arith.constant 0 : index
    %c0_94 = arith.constant 0 : index
    %104 = vector.load %arg7[%c0_93, %c0_94] : memref<1x64xf32, #tpu.memory_space<vmem>>, vector<1x64xf32>
    %105 = vector.broadcast %104 : vector<1x64xf32> to vector<16x64xf32>
    %106 = arith.addf %103, %105 : vector<16x64xf32>
    %cst_95 = arith.constant 0.000000e+00 : f32
    %107 = vector.broadcast %cst_95 : f32 to vector<16x64xf32>
    %108 = arith.maximumf %106, %107 : vector<16x64xf32>
    %c0_96 = arith.constant 0 : index
    %c0_97 = arith.constant 0 : index
    %109 = vector.load %arg20[%c0_96, %c0_97] : memref<16x64xf32, #tpu.memory_space<vmem>>, vector<16x64xf32>
    tpu.vector_store %arg20[%c0_96, %c0_97], %108 {strides = array<i32>} : memref<16x64xf32, #tpu.memory_space<vmem>>, vector<16x64xf32>,
    %c0_98 = arith.constant 0 : index
    %c0_99 = arith.constant 0 : index
    %110 = tpu.strided_load %arg20[%c0_98, %c0_99] {strides = array<i32: 2, 1>} : memref<16x64xf32, #tpu.memory_space<vmem>>, vector<8x64xf32>
    %c1_100 = arith.constant 1 : index
    %c0_101 = arith.constant 0 : index
    %111 = tpu.strided_load %arg20[%c1_100, %c0_101] {strides = array<i32: 2, 1>} : memref<16x64xf32, #tpu.memory_space<vmem>>, vector<8x64xf32>
    %112 = arith.maximumf %110, %111 : vector<8x64xf32>
    %cst_102 = arith.constant 0.000000e+00 : f32
    %113 = vector.broadcast %cst_102 : f32 to vector<14x64xf32>
    %c0_103 = arith.constant 0 : index
    %c0_104 = arith.constant 0 : index
    %114 = vector.load %arg21[%c0_103, %c0_104] : memref<14x64xf32, #tpu.memory_space<vmem>>, vector<14x64xf32>
    tpu.vector_store %arg21[%c0_103, %c0_104], %113 {strides = array<i32>} : memref<14x64xf32, #tpu.memory_space<vmem>>, vector<14x64xf32>,
    %c3_105 = arith.constant 3 : index
    %c0_106 = arith.constant 0 : index
    %115 = vector.load %arg21[%c3_105, %c0_106] : memref<14x64xf32, #tpu.memory_space<vmem>>, vector<8x64xf32>
    tpu.vector_store %arg21[%c3_105, %c0_106], %112 {strides = array<i32>} : memref<14x64xf32, #tpu.memory_space<vmem>>, vector<8x64xf32>,
    %c0_107 = arith.constant 0 : index
    %c0_108 = arith.constant 0 : index
    %116 = vector.load %arg21[%c0_107, %c0_108] : memref<14x64xf32, #tpu.memory_space<vmem>>, vector<8x64xf32>
    %c1_109 = arith.constant 1 : index
    %c0_110 = arith.constant 0 : index
    %117 = vector.load %arg21[%c1_109, %c0_110] : memref<14x64xf32, #tpu.memory_space<vmem>>, vector<8x64xf32>
    %c2_111 = arith.constant 2 : index
    %c0_112 = arith.constant 0 : index
    %118 = vector.load %arg21[%c2_111, %c0_112] : memref<14x64xf32, #tpu.memory_space<vmem>>, vector<8x64xf32>
    %c3_113 = arith.constant 3 : index
    %c0_114 = arith.constant 0 : index
    %119 = vector.load %arg21[%c3_113, %c0_114] : memref<14x64xf32, #tpu.memory_space<vmem>>, vector<8x64xf32>
    %c4_115 = arith.constant 4 : index
    %c0_116 = arith.constant 0 : index
    %120 = vector.load %arg21[%c4_115, %c0_116] : memref<14x64xf32, #tpu.memory_space<vmem>>, vector<8x64xf32>
    %c5_117 = arith.constant 5 : index
    %c0_118 = arith.constant 0 : index
    %121 = vector.load %arg21[%c5_117, %c0_118] : memref<14x64xf32, #tpu.memory_space<vmem>>, vector<8x64xf32>
    %c6_119 = arith.constant 6 : index
    %c0_120 = arith.constant 0 : index
    %122 = vector.load %arg21[%c6_119, %c0_120] : memref<14x64xf32, #tpu.memory_space<vmem>>, vector<8x64xf32>
    %123 = tpu.concatenate %116, %117, %118, %119, %120, %121, %122 in 1 : vector<8x64xf32>, vector<8x64xf32>, vector<8x64xf32>, vector<8x64xf32>, vector<8x64xf32>, vector<8x64xf32>, vector<8x64xf32> -> vector<8x448xf32>
    %c0_121 = arith.constant 0 : index
    %c0_122 = arith.constant 0 : index
    %124 = vector.load %arg8[%c0_121, %c0_122] : memref<448x128xf32, #tpu.memory_space<vmem>>, vector<448x128xf32>
    %cst_123 = arith.constant dense<0.000000e+00> : vector<8x128xf32>
    %125 = tpu.matmul %123, %124, %cst_123 {dimension_numbers = #tpu.dot_dimension_numbers<[1], [0], [0], [1], [0, 0, 1, 1], [], []>} : vector<8x448xf32>, vector<448x128xf32>, vector<8x128xf32> -> vector<8x128xf32>
    %c0_124 = arith.constant 0 : index
    %c0_125 = arith.constant 0 : index
    %126 = vector.load %arg9[%c0_124, %c0_125] : memref<1x128xf32, #tpu.memory_space<vmem>>, vector<1x128xf32>
    %127 = vector.broadcast %126 : vector<1x128xf32> to vector<8x128xf32>
    %128 = arith.addf %125, %127 : vector<8x128xf32>
    %cst_126 = arith.constant 0.000000e+00 : f32
    %129 = vector.broadcast %cst_126 : f32 to vector<8x128xf32>
    %130 = arith.maximumf %128, %129 : vector<8x128xf32>
    %c0_127 = arith.constant 0 : index
    %c0_128 = arith.constant 0 : index
    %131 = vector.load %arg22[%c0_127, %c0_128] : memref<8x128xf32, #tpu.memory_space<vmem>>, vector<8x128xf32>
    tpu.vector_store %arg22[%c0_127, %c0_128], %130 {strides = array<i32>} : memref<8x128xf32, #tpu.memory_space<vmem>>, vector<8x128xf32>,
    %c0_129 = arith.constant 0 : index
    %c0_130 = arith.constant 0 : index
    %132 = tpu.strided_load %arg22[%c0_129, %c0_130] {strides = array<i32: 2, 1>} : memref<8x128xf32, #tpu.memory_space<vmem>>, vector<4x128xf32>
    %c1_131 = arith.constant 1 : index
    %c0_132 = arith.constant 0 : index
    %133 = tpu.strided_load %arg22[%c1_131, %c0_132] {strides = array<i32: 2, 1>} : memref<8x128xf32, #tpu.memory_space<vmem>>, vector<4x128xf32>
    %134 = arith.maximumf %132, %133 : vector<4x128xf32>
    %c0_133 = arith.constant 0 : index
    %c0_134 = arith.constant 0 : index
    %135 = vector.load %arg23[%c0_133, %c0_134] : memref<4x128xf32, #tpu.memory_space<vmem>>, vector<4x128xf32>
    tpu.vector_store %arg23[%c0_133, %c0_134], %134 {strides = array<i32>} : memref<4x128xf32, #tpu.memory_space<vmem>>, vector<4x128xf32>,
    %c0_135 = arith.constant 0 : index
    %c0_136 = arith.constant 0 : index
    %136 = vector.load %arg23[%c0_135, %c0_136] : memref<4x128xf32, #tpu.memory_space<vmem>>, vector<1x128xf32>
    %c1_137 = arith.constant 1 : index
    %c0_138 = arith.constant 0 : index
    %137 = vector.load %arg23[%c1_137, %c0_138] : memref<4x128xf32, #tpu.memory_space<vmem>>, vector<1x128xf32>
    %c2_139 = arith.constant 2 : index
    %c0_140 = arith.constant 0 : index
    %138 = vector.load %arg23[%c2_139, %c0_140] : memref<4x128xf32, #tpu.memory_space<vmem>>, vector<1x128xf32>
    %c3_141 = arith.constant 3 : index
    %c0_142 = arith.constant 0 : index
    %139 = vector.load %arg23[%c3_141, %c0_142] : memref<4x128xf32, #tpu.memory_space<vmem>>, vector<1x128xf32>
    %140 = tpu.concatenate %136, %137, %138, %139 in 1 : vector<1x128xf32>, vector<1x128xf32>, vector<1x128xf32>, vector<1x128xf32> -> vector<1x512xf32>
    %c0_143 = arith.constant 0 : index
    %c0_144 = arith.constant 0 : index
    %141 = vector.load %arg10[%c0_143, %c0_144] : memref<512x32xf32, #tpu.memory_space<vmem>>, vector<512x32xf32>
    %cst_145 = arith.constant dense<0.000000e+00> : vector<1x32xf32>
    %142 = tpu.matmul %140, %141, %cst_145 {dimension_numbers = #tpu.dot_dimension_numbers<[1], [0], [0], [1], [0, 0, 1, 1], [], []>} : vector<1x512xf32>, vector<512x32xf32>, vector<1x32xf32> -> vector<1x32xf32>
    %c0_146 = arith.constant 0 : index
    %c0_147 = arith.constant 0 : index
    %143 = vector.load %arg11[%c0_146, %c0_147] : memref<1x32xf32, #tpu.memory_space<vmem>>, vector<1x32xf32>
    %144 = arith.addf %142, %143 : vector<1x32xf32>
    %cst_148 = arith.constant 0.000000e+00 : f32
    %145 = vector.broadcast %cst_148 : f32 to vector<1x32xf32>
    %146 = arith.maximumf %144, %145 : vector<1x32xf32>
    %c0_149 = arith.constant 0 : index
    %c0_150 = arith.constant 0 : index
    %147 = vector.load %arg12[%c0_149, %c0_150] : memref<32x6xf32, #tpu.memory_space<vmem>>, vector<32x6xf32>
    %cst_151 = arith.constant dense<0.000000e+00> : vector<1x6xf32>
    %148 = tpu.matmul %146, %147, %cst_151 {dimension_numbers = #tpu.dot_dimension_numbers<[1], [0], [0], [1], [0, 0, 1, 1], [], []>} : vector<1x32xf32>, vector<32x6xf32>, vector<1x6xf32> -> vector<1x6xf32>
    %c0_152 = arith.constant 0 : index
    %c0_153 = arith.constant 0 : index
    %149 = vector.load %arg13[%c0_152, %c0_153] : memref<1x6xf32, #tpu.memory_space<vmem>>, vector<1x6xf32>
    %150 = arith.addf %148, %149 : vector<1x6xf32>
    %c0_154 = arith.constant 0 : index
    %c0_155 = arith.constant 0 : index
    %c0_156 = arith.constant 0 : index
    %151 = vector.load %arg14[%c0_154, %c0_155, %c0_156] : memref<1x1x6xf32, #tpu.memory_space<vmem>>, vector<1x1x6xf32>
    %152 = vector.shape_cast %151 : vector<1x1x6xf32> to vector<1x6xf32>
    %153 = vector.shape_cast %150 : vector<1x6xf32> to vector<1x1x6xf32>
    tpu.vector_store %arg14[%c0_154, %c0_155, %c0_156], %153 {strides = array<i32>} : memref<1x1x6xf32, #tpu.memory_space<vmem>>, vector<1x1x6xf32>,
    return
  }
  func.func @transform_0(%arg0: i32) -> (i32, i32, i32) {
    %c0_i32 = arith.constant 0 : i32
    %c0_i32_0 = arith.constant 0 : i32
    %c0_i32_1 = arith.constant 0 : i32
    return %arg0, %c0_i32, %c0_i32_0 : i32, i32, i32
  }
  func.func @transform_1(%arg0: i32) -> (i32, i32) {
    %c0_i32 = arith.constant 0 : i32
    %c0_i32_0 = arith.constant 0 : i32
    %c0_i32_1 = arith.constant 0 : i32
    return %c0_i32, %c0_i32_0 : i32, i32
  }
  func.func @transform_2(%arg0: i32) -> (i32, i32) {
    %c0_i32 = arith.constant 0 : i32
    %c0_i32_0 = arith.constant 0 : i32
    %c0_i32_1 = arith.constant 0 : i32
    return %c0_i32, %c0_i32_0 : i32, i32
  }
  func.func @transform_3(%arg0: i32) -> (i32, i32) {
    %c0_i32 = arith.constant 0 : i32
    %c0_i32_0 = arith.constant 0 : i32
    %c0_i32_1 = arith.constant 0 : i32
    return %c0_i32, %c0_i32_0 : i32, i32
  }
  func.func @transform_4(%arg0: i32) -> (i32, i32) {
    %c0_i32 = arith.constant 0 : i32
    %c0_i32_0 = arith.constant 0 : i32
    %c0_i32_1 = arith.constant 0 : i32
    return %c0_i32, %c0_i32_0 : i32, i32
  }
  func.func @transform_5(%arg0: i32) -> (i32, i32) {
    %c0_i32 = arith.constant 0 : i32
    %c0_i32_0 = arith.constant 0 : i32
    %c0_i32_1 = arith.constant 0 : i32
    return %c0_i32, %c0_i32_0 : i32, i32
  }
  func.func @transform_6(%arg0: i32) -> (i32, i32) {
    %c0_i32 = arith.constant 0 : i32
    %c0_i32_0 = arith.constant 0 : i32
    %c0_i32_1 = arith.constant 0 : i32
    return %c0_i32, %c0_i32_0 : i32, i32
  }
  func.func @transform_7(%arg0: i32) -> (i32, i32) {
    %c0_i32 = arith.constant 0 : i32
    %c0_i32_0 = arith.constant 0 : i32
    %c0_i32_1 = arith.constant 0 : i32
    return %c0_i32, %c0_i32_0 : i32, i32
  }
  func.func @transform_8(%arg0: i32) -> (i32, i32) {
    %c0_i32 = arith.constant 0 : i32
    %c0_i32_0 = arith.constant 0 : i32
    %c0_i32_1 = arith.constant 0 : i32
    return %c0_i32, %c0_i32_0 : i32, i32
  }
  func.func @transform_9(%arg0: i32) -> (i32, i32) {
    %c0_i32 = arith.constant 0 : i32
    %c0_i32_0 = arith.constant 0 : i32
    %c0_i32_1 = arith.constant 0 : i32
    return %c0_i32, %c0_i32_0 : i32, i32
  }
  func.func @transform_10(%arg0: i32) -> (i32, i32) {
    %c0_i32 = arith.constant 0 : i32
    %c0_i32_0 = arith.constant 0 : i32
    %c0_i32_1 = arith.constant 0 : i32
    return %c0_i32, %c0_i32_0 : i32, i32
  }
  func.func @transform_11(%arg0: i32) -> (i32, i32) {
    %c0_i32 = arith.constant 0 : i32
    %c0_i32_0 = arith.constant 0 : i32
    %c0_i32_1 = arith.constant 0 : i32
    return %c0_i32, %c0_i32_0 : i32, i32
  }
  func.func @transform_12(%arg0: i32) -> (i32, i32) {
    %c0_i32 = arith.constant 0 : i32
    %c0_i32_0 = arith.constant 0 : i32
    %c0_i32_1 = arith.constant 0 : i32
    return %c0_i32, %c0_i32_0 : i32, i32
  }
  func.func @transform_13(%arg0: i32) -> (i32, i32, i32) {
    %c0_i32 = arith.constant 0 : i32
    %c0_i32_0 = arith.constant 0 : i32
    %c0_i32_1 = arith.constant 0 : i32
    return %arg0, %c0_i32, %c0_i32_0 : i32, i32, i32
  }
}

</mosaic_0001>

<bundles_post_ra>
// kernel: spectral_cnn_forward.1
= control target key start
LH: loop header
LB: loop body
LE: loop exit
PB: predicated region body
PF: predicated region fallthrough
CT: control target
= control target key end

     0   :  { %s3844_s0 = inlined_call_operand.vmem [shape: f32[2,64,1], index: 0, kind: input, shape index: {}]   ;;  %s3845_s1 = inlined_call_operand.vmem [shape: f32[9,16], index: 1, kind: input, shape index: {}]   ;;  %s3846_s2 = inlined_call_operand.vmem [shape: f32[1,16], index: 2, kind: input, shape index: {}]   ;;  %s3847_s3 = inlined_call_operand.vmem [shape: f32[112,32], index: 3, kind: input, shape index: {}]   ;;  %s3848_s4 = inlined_call_operand.vmem [shape: f32[1,32], index: 4, kind: input, shape index: {}]   ;;  %s3849_s5 = inlined_call_operand.vmem [shape: f32[224,64], index: 5, kind: input, shape index: {}]   ;;  %s3850_s6 = inlined_call_operand.vmem [shape: f32[1,64], index: 6, kind: input, shape index: {}]   ;;  %s3851_s7 = inlined_call_operand.vmem [shape: f32[448,128], index: 7, kind: input, shape index: {}]   ;;  %s3852_s8 = inlined_call_operand.vmem [shape: f32[1,128], index: 8, kind: input, shape index: {}]   ;;  %s3853_s9 = inlined_call_operand.vmem [shape: f32[512,32], index: 9, kind: input, shape index: {}]   ;;  %s3854_s10 = inlined_call_operand.vmem [shape: f32[1,32], index: 10, kind: input, shape index: {}]   ;;  %s3855_s11 = inlined_call_operand.vmem [shape: f32[32,6], index: 11, kind: input, shape index: {}]   ;;  %s3856_s12 = inlined_call_operand.vmem [shape: f32[1,6], index: 12, kind: input, shape index: {}]   ;;  %s3857_s13 = inlined_call_operand.hbm [shape: f32[2,1,6], index: 13, kind: output, shape index: {}]  }
   0x1   :  { %3868 = sst [smem:[#allocation14_spill]] %s3844_s0 }
   0x2   :  { %3869 = sst [smem:[#allocation15_spill]] %s3845_s1 }
   0x3   :  { %3870 = sst [smem:[#allocation16_spill]] %s3846_s2 }
   0x4   :  { %3871 = sst [smem:[#allocation17_spill]] %s3847_s3 }
   0x5   :  { %18 = vsyncpa [#allocation12], 0 }
   0x6   :  { %20 = vsyncpa [#allocation12 + $0x1], 0  ;;  %s2850_s25 = smov 0   ;;  %s2852_s26 = smov 0  }
   0x7   :  { %s2854_s27 = smov 0   ;;  %s2856_s28 = smov 0  }
   0x8 LB: > { %s2871_s29 = sadd.s32 4294967295, %s2767_s28   ;;  %s2227_s30 = sadd.s32 4294967294, %s2767_s28   ;;  %s2767_s28 = sphi %s2856_s28, %s3886_s28   ;;  %s2763_s27 = sphi %s2854_s27, %s3885_s27   ;;  %s2759_s26 = sphi %s2852_s26, %s3884_s26   ;;  %s2755_s25 = sphi %s2850_s25, %s3883_s25  }
   0x9   : > { %s2875_s14 = sadd.s32 1, %s2767_s28   ;;  %s311_s15 = sadd.s32 1, %s2763_s27 }
   0xa   : > { %s308_s16 = ssub.s32 %s2767_s28, %s2875_s14  ;;  %p321_p0 = scmp.ne.s32.totalorder %s2763_s27, %s2759_s26 }
   0xb   : > { %p309_p1 = scmp.eq.s32.totalorder %s308_s16, 0  ;;  %p322_p2 = scmp.eq.s32.totalorder %s2871_s29, 1 }
   0xc   : > { %p327_p3 = scmp.ne.s32.totalorder %s2759_s26, %s2755_s25  ;;  %p328_p4 = scmp.eq.s32.totalorder %s2227_s30, 1 }
   0xd   : > { %s2886_s17 = scalar_select %p309_p1, %s2763_s27, %s311_s15  }
   0xe   : > { %p2888_p5 = por %p322_p2, %p321_p0  ;;  %p2892_p6 = por %p328_p4, %p327_p3 }
   0xf   : > { %p2230_p7 = scmp.ge.s32.totalorder %s2767_s28, 1  ;;  %p390_p8 = scmp.lt.s32.totalorder %s2767_s28, 3 }
  0x11   : > { %p391_p9 = pnand %p2230_p7, %p390_p8 }
  0x12   : > { %vm438_vm0 = vcmask (!%p391_p9), 7168   ;;  %p433_p10 = scmp.lt.s32.totalorder (!%p391_p9), %s2871_s29, 1  ;;  %v2769_v0 = vmov (!%p391_p9), 0   ;;  %v2770_v1 = vmov (!%p391_p9), 0.0   ;;  %s3874_s0 = sld [smem:[#allocation14_spill]] (!%p391_p9)  ;;  %vm1109_vm1 = vcmask (!%p391_p9), 130048  }
  0x13   : > { %394 = sbr.rel (%p391_p9) target bundleno = 1920 (0x780), region = 72  ;;  %2688 = vset.pattern.permute.xlu0 (!%p391_p9), %v2769_v0  ;;  %439 = vst.msk [vmem:[#allocation2] sm:$0xff] (!%p391_p9), %vm438_vm0, %v2770_v1  ;;  %440 = vst.msk [vmem:[#allocation2 + $0x8] sm:$0xff] (!%p391_p9), %vm438_vm0, %v2770_v1  ;;  %2689 = vset.pattern.permute.xlu1 (!%p391_p9), %v2769_v0  ;;  %s3875_s1 = sld [smem:[#allocation15_spill]] (!%p391_p9)  ;;  %vm1141_vm2 = vcmask (!%p391_p9), 128000   ;;  %vm1275_vm3 = vcmask (!%p391_p9), 261120  }
  0x14   : > { %441 = vst.msk [vmem:[#allocation2 + $0x10] sm:$0xff] (!%p391_p9), %vm438_vm0, %v2770_v1  ;;  %442 = vst.msk [vmem:[#allocation2 + $0x18] sm:$0xff] (!%p391_p9), %vm438_vm0, %v2770_v1  ;;  %s3876_s2 = sld [smem:[#allocation16_spill]] (!%p391_p9)  ;;  %s3877_s3 = sld [smem:[#allocation17_spill]] (!%p391_p9)  ;;  %vm1285_vm4 = vcmask (!%p391_p9), 523264   ;;  %vm1280_vm5 = vcmask (!%p391_p9), 392192  }
  0x15   : > { %443 = vst.msk [vmem:[#allocation2 + $0x20] sm:$0xff] (!%p391_p9), %vm438_vm0, %v2770_v1  ;;  %444 = vst.msk [vmem:[#allocation2 + $0x28] sm:$0xff] (!%p391_p9), %vm438_vm0, %v2770_v1  ;;  %s3860_s30 = smov (!%p391_p9), 16   ;;  %s3858_s16 = smov (!%p391_p9), 32   ;;  %vm1290_vm6 = vcmask (!%p391_p9), 654336   ;;  %vm1295_vm7 = vcmask (!%p391_p9), 785408  }
  0x16   : > { %445 = vst.msk [vmem:[#allocation2 + $0x30] sm:$0xff] (!%p391_p9), %vm438_vm0, %v2770_v1  ;;  %446 = vst.msk [vmem:[#allocation2 + $0x38] sm:$0xff] (!%p391_p9), %vm438_vm0, %v2770_v1  ;;  %s3879_s23 = smov (!%p391_p9), 48   ;;  %s3866_s15 = smov (!%p391_p9), 96   ;;  %vm1321_vm8 = vcmask (!%p391_p9), 916480   ;;  %vm1438_vm9 = vcmask (!%p391_p9), 259072  }
  0x17   : > { %447 = vst.msk [vmem:[#allocation2 + $0x40] sm:$0xff] (!%p391_p9), %vm438_vm0, %v2770_v1  ;;  %448 = vst.msk [vmem:[#allocation2 + $0x48] sm:$0xff] (!%p391_p9), %vm438_vm0, %v2770_v1  ;;  %s3882_s22 = smov (!%p391_p9), 64   ;;  %vm1631_vm10 = vcmask (!%p391_p9), 521216   ;;  %vm2778_vm11 = vmmov (!%p391_p9), 0   ;;  %vm2157_vm12 = vcmask (!%p391_p9), 40960  }
  0x18   : > { %1137 = vst.msk [vmem:[#allocation4] sm:$0xff] (!%p391_p9), %vm1109_vm1, %v2770_v1  ;;  %1138 = vst.msk [vmem:[#allocation4 + $0x8] sm:$0xff] (!%p391_p9), %vm1109_vm1, %v2770_v1 }
  0x19   : > { %1139 = vst.msk [vmem:[#allocation4 + $0x10] sm:$0xff] (!%p391_p9), %vm1109_vm1, %v2770_v1  ;;  %1140 = vst.msk [vmem:[#allocation4 + $0x18] sm:$0xff] (!%p391_p9), %vm1109_vm1, %v2770_v1  ;;  %v2233_v58 = vld [vmem:[%s3875_s1] ss:$0 sm:$0xff] (!%p391_p9)  ;;  %v2234_v59 = vld [vmem:[%s3875_s1 + $0x1] ss:$0 sm:$0xff] (!%p391_p9) }
  0x1a   : > { %s434_s20 = scalar_select %p433_p10, %s2871_s29, 1  ;;  %v465_v8 = vld [vmem:[#allocation2] sm:$0xff]  ;;  %1142 = vst.msk [vmem:[#allocation4 + $0x20] sm:$0x3f] %vm1141_vm2, %v2770_v1 }
  0x1b   : > { %476 = vperm.xlu0 %2688, %v465_v8   ;;  %v2980_v62 = vld [vmem:[%s3875_s1 + $0x2] ss:$0 sm:$0xff]  ;;  %v2986_v8 = vld [vmem:[%s3875_s1 + $0x3] ss:$0 sm:$0xff]  ;;  %1436 = vst.msk [vmem:[#allocation6] sm:$0xff] %vm1275_vm3, %v2770_v1  ;;  %1437 = vst.msk [vmem:[#allocation6 + $0x8] sm:$0xff] %vm1275_vm3, %v2770_v1 }
  0x1c   : > { %s2257_s21 = sshll.u32 %s434_s20, 6  ;;  %1630 = vst.msk [vmem:[#allocation8] sm:$0xff] %vm1285_vm4, %v2770_v1  ;;  %s3862_s20 = smov 48  }
  0x1d   : > { %s437_s24 = scalar_lea.vmem %s3874_s0, %s2257_s21  ;;  %s3864_s0 = smov 64   ;;  %1439 = vst.msk [vmem:[#allocation6 + $0x10] sm:$0x3f] %vm1438_vm9, %v2770_v1 }
  0x1e   : > { %v449_v2 = vld [vmem:[%s437_s24] sm:$0xff]  ;;  %v450_v3 = vld [vmem:[%s437_s24 + $0x8] sm:$0xff]  ;;  %v451_v4 = vld [vmem:[%s437_s24 + $0x10] sm:$0xff]  ;;  %s3878_s21 = smov 32   ;;  %1632 = vst.msk [vmem:[#allocation8 + $0x8] sm:$0x3f] %vm1631_vm10, %v2770_v1 }
  0x1f   : > { %457 = vst.msk [vmem:[#allocation2 + $0x8] sm:$0xff] %vm438_vm0, %v449_v2  ;;  %458 = vst.msk [vmem:[#allocation2 + $0x10] sm:$0xff] %vm438_vm0, %v450_v3  ;;  %v452_v5 = vld [vmem:[%s437_s24 + $0x18] sm:$0xff]  ;;  %v453_v6 = vld [vmem:[%s437_s24 + $0x20] sm:$0xff] }
  0x20   : > { %459 = vst.msk [vmem:[#allocation2 + $0x18] sm:$0xff] %vm438_vm0, %v451_v4  ;;  %v454_v7 = vld [vmem:[%s437_s24 + $0x28] sm:$0xff]  ;;  %460 = vst.msk [vmem:[#allocation2 + $0x20] sm:$0xff] %vm438_vm0, %v452_v5  ;;  %v455_v9 = vld [vmem:[%s437_s24 + $0x30] sm:$0xff] }
  0x21   : > { %461 = vst.msk [vmem:[#allocation2 + $0x28] sm:$0xff] %vm438_vm0, %v453_v6  ;;  %462 = vst.msk [vmem:[#allocation2 + $0x30] sm:$0xff] %vm438_vm0, %v454_v7  ;;  %v456_v10 = vld [vmem:[%s437_s24 + $0x38] sm:$0xff]  ;;  %v1024_v53 = vld [vmem:[#allocation2 + $0x48] sm:$0xff]  ;;  %s3880_s24 = smov 16  }
  0x22   : > { %463 = vst.msk [vmem:[#allocation2 + $0x38] sm:$0xff] %vm438_vm0, %v455_v9  ;;  %464 = vst.msk [vmem:[#allocation2 + $0x40] sm:$0xff] %vm438_vm0, %v456_v10 }
  0x26   : > { %v534_v11 = vld [vmem:[#allocation2 + $0x2] sm:$0xff]  ;;  %v535_v13 = vld [vmem:[#allocation2 + $0xa] sm:$0xff] }
  0x27   : > { %v466_v12 = vld [vmem:[#allocation2 + $0x8] sm:$0xff]  ;;  %545 = vperm.xlu1 %2689, %v534_v11   ;;  %v2933_v14 = vld [vmem:[#allocation2 + $0x10] sm:$0xff]  ;;  %v2936_v15 = vld [vmem:[#allocation2 + $0x18] sm:$0xff] }
  0x28   : > { %481 = vperm.xlu0 %2688, %v466_v12   ;;  %v536_v16 = vld [vmem:[#allocation2 + $0x12] sm:$0xff]  ;;  %v537_v17 = vld [vmem:[#allocation2 + $0x1a] sm:$0xff]  ;;  %v603_v18 = vld [vmem:[#allocation2 + $0x4] sm:$0xff] }
  0x29   : > { %v604_v19 = vld [vmem:[#allocation2 + $0xc] sm:$0xff]  ;;  %v605_v20 = vld [vmem:[#allocation2 + $0x14] sm:$0xff]  ;;  %v606_v21 = vld [vmem:[#allocation2 + $0x1c] sm:$0xff] }
  0x2a   : > { %v2939_v22 = vld [vmem:[#allocation2 + $0x20] sm:$0xff]  ;;  %v2942_v23 = vld [vmem:[#allocation2 + $0x28] sm:$0xff]  ;;  %v2945_v28 = vld [vmem:[#allocation2 + $0x30] sm:$0xff] }
  0x2b   : > { %550 = vperm.xlu1 %2689, %v535_v13   ;;  %v538_v24 = vld [vmem:[#allocation2 + $0x22] sm:$0xff]  ;;  %v539_v25 = vld [vmem:[#allocation2 + $0x2a] sm:$0xff]  ;;  %v2948_v29 = vld [vmem:[#allocation2 + $0x38] sm:$0xff] }
  0x2c   : > { %486 = vperm.xlu0 %2688, %v2933_v14   ;;  %v672_v26 = vld [vmem:[#allocation2 + $0x6] sm:$0xff]  ;;  %v673_v27 = vld [vmem:[#allocation2 + $0xe] sm:$0xff]  ;;  %v541_v31 = vld [vmem:[#allocation2 + $0x3a] sm:$0xff] }
  0x2d   : > { %v540_v30 = vld [vmem:[#allocation2 + $0x32] sm:$0xff]  ;;  %v675_v33 = vld [vmem:[#allocation2 + $0x1e] sm:$0xff]  ;;  %v676_v38 = vld [vmem:[#allocation2 + $0x26] sm:$0xff] }
  0x2e   : > { %v674_v32 = vld [vmem:[#allocation2 + $0x16] sm:$0xff]  ;;  %v607_v34 = vld [vmem:[#allocation2 + $0x24] sm:$0xff]  ;;  %v608_v35 = vld [vmem:[#allocation2 + $0x2c] sm:$0xff] }
  0x2f   : > { %491 = vperm.xlu1 %2689, %v2936_v15   ;;  %v609_v36 = vld [vmem:[#allocation2 + $0x34] sm:$0xff]  ;;  %v610_v37 = vld [vmem:[#allocation2 + $0x3c] sm:$0xff]  ;;  %v886_v44 = vld [vmem:[#allocation2 + $0x44] sm:$0xff] }
  0x30   : > { %555 = vperm.xlu0 %2688, %v536_v16   ;;  %v677_v39 = vld [vmem:[#allocation2 + $0x2e] sm:$0xff]  ;;  %v678_v40 = vld [vmem:[#allocation2 + $0x36] sm:$0xff]  ;;  %v679_v41 = vld [vmem:[#allocation2 + $0x3e] sm:$0xff] }
  0x31   : > { %v748_v42 = vld [vmem:[#allocation2 + $0x40] sm:$0xff] }
  0x32   : > { %v817_v43 = vld [vmem:[#allocation2 + $0x42] sm:$0xff] }
  0x33   : > { %560 = vperm.xlu1 %2689, %v537_v17   ;;  %v955_v48 = vld [vmem:[#allocation2 + $0x46] sm:$0xff] }
  0x34   : > { %614 = vperm.xlu0 %2688, %v603_v18  }
  0x37   : > { %619 = vperm.xlu1 %2689, %v604_v19  }
  0x38   : > { %624 = vperm.xlu0 %2688, %v605_v20  }
  0x3b   : > { %629 = vperm.xlu1 %2689, %v606_v21  }
  0x3c   : > { %496 = vperm.xlu0 %2688, %v2939_v22  }
  0x3f   : > { %501 = vperm.xlu1 %2689, %v2942_v23  }
  0x40   : > { %565 = vperm.xlu0 %2688, %v538_v24  }
  0x43   : > { %570 = vperm.xlu1 %2689, %v539_v25  }
  0x44   : > { %683 = vperm.xlu0 %2688, %v672_v26  }
  0x47   : > { %688 = vperm.xlu1 %2689, %v673_v27  }
  0x48   : > { %506 = vperm.xlu0 %2688, %v2945_v28  }
  0x4b   : > { %511 = vperm.xlu1 %2689, %v2948_v29  }
  0x4c   : > { %575 = vperm.xlu0 %2688, %v540_v30  }
  0x4f   : > { %580 = vperm.xlu1 %2689, %v541_v31  }
  0x50   : > { %693 = vperm.xlu0 %2688, %v674_v32  }
  0x53   : > { %698 = vperm.xlu1 %2689, %v675_v33  }
  0x54   : > { %634 = vperm.xlu0 %2688, %v607_v34  }
  0x57   : > { %639 = vperm.xlu1 %2689, %v608_v35  }
  0x58   : > { %752 = vperm.xlu0 %2688, %v466_v12  }
  0x5b   : > { %757 = vperm.xlu1 %2689, %v2933_v14  }
  0x5c   : > { %644 = vperm.xlu0 %2688, %v609_v36  }
  0x5f   : > { %649 = vperm.xlu1 %2689, %v610_v37  }
  0x60   : > { %762 = vperm.xlu0 %2688, %v2936_v15  }
  0x63   : > { %767 = vperm.xlu1 %2689, %v2939_v22  }
  0x64   : > { %703 = vperm.xlu0 %2688, %v676_v38  }
  0x67   : > { %708 = vperm.xlu1 %2689, %v677_v39  }
  0x68   : > { %821 = vperm.xlu0 %2688, %v535_v13  }
  0x6b   : > { %826 = vperm.xlu1 %2689, %v536_v16  }
  0x6c   : > { %713 = vperm.xlu0 %2688, %v678_v40  }
  0x6f   : > { %718 = vperm.xlu1 %2689, %v679_v41  }
  0x70   : > { %831 = vperm.xlu0 %2688, %v537_v17  }
  0x73   : > { %836 = vperm.xlu1 %2689, %v538_v24  }
  0x74   : > { %772 = vperm.xlu0 %2688, %v2942_v23  }
  0x77   : > { %777 = vperm.xlu1 %2689, %v2945_v28  }
  0x78   : > { %890 = vperm.xlu0 %2688, %v604_v19  }
  0x7b   : > { %895 = vperm.xlu1 %2689, %v605_v20  }
  0x7c   : > { %782 = vperm.xlu0 %2688, %v2948_v29  }
  0x7f   : > { %787 = vperm.xlu1 %2689, %v748_v42  }
  0x80   : > { %900 = vperm.xlu0 %2688, %v606_v21  }
  0x83   : > { %905 = vperm.xlu1 %2689, %v607_v34  }
  0x84   : > { %841 = vperm.xlu0 %2688, %v539_v25  }
  0x87   : > { %846 = vperm.xlu1 %2689, %v540_v30  }
  0x88   : > { %959 = vperm.xlu0 %2688, %v673_v27  }
  0x8b   : > { %964 = vperm.xlu1 %2689, %v674_v32  }
  0x8c   : > { %851 = vperm.xlu0 %2688, %v541_v31  }
  0x8f   : > { %856 = vperm.xlu1 %2689, %v817_v43  }
  0x90   : > { %969 = vperm.xlu0 %2688, %v675_v33  }
  0x93   : > { %974 = vperm.xlu1 %2689, %v676_v38  }
  0x94   : > { %910 = vperm.xlu0 %2688, %v608_v35  }
  0x97   : > { %915 = vperm.xlu1 %2689, %v609_v36  }
  0x98   : > { %1028 = vperm.xlu0 %2688, %v2933_v14  }
  0x9a   : > { %v477_v45 = vpop.permute.xlu0 %476 }
  0x9b   : > { %1033 = vperm.xlu1 %2689, %v2936_v15   ;;  %v518_v63 = vmul.f32 %v2233_v58, %v477_v45 }
  0x9c   : > { %920 = vperm.xlu0 %2688, %v610_v37  }
  0x9f   : > { %925 = vperm.xlu1 %2689, %v886_v44  }
  0xa0   : > { %1038 = vperm.xlu0 %2688, %v2939_v22  }
  0xa3   : > { %1043 = vperm.xlu1 %2689, %v2942_v23  }
  0xa4   : > { %979 = vperm.xlu0 %2688, %v677_v39  }
  0xa6   : > { %v546_v46 = vpop.permute.xlu1 %545 }
  0xa7   : > { %v482_v47 = vpop.permute.xlu0 %481  ;;  %984 = vperm.xlu1 %2689, %v678_v40   ;;  %v587_v0 = vmul.f32 %v2234_v59, %v546_v46 }
  0xa8   : > { %989 = vperm.xlu0 %2688, %v679_v41   ;;  %v519_v11 = vmul.f32 %v2233_v58, %v482_v47 }
  0xa9   : > { %v595_v7 = vadd.f32 %v587_v0, %v518_v63 }
  0xaa   : > { %v551_v49 = vpop.permute.xlu1 %550 }
  0xab   : > { %v487_v50 = vpop.permute.xlu0 %486  ;;  %994 = vperm.xlu1 %2689, %v955_v48   ;;  %v588_v9 = vmul.f32 %v2234_v59, %v551_v49 }
  0xac   : > { %1048 = vperm.xlu0 %2688, %v2945_v28   ;;  %v520_v28 = vmul.f32 %v2233_v58, %v487_v50 }
  0xad   : > { %v596_v19 = vadd.f32 %v588_v9, %v519_v11 }
  0xae   : > { %v492_v51 = vpop.permute.xlu1 %491 }
  0xaf   : > { %v556_v52 = vpop.permute.xlu0 %555  ;;  %1053 = vperm.xlu1 %2689, %v2948_v29   ;;  %v521_v37 = vmul.f32 %v2233_v58, %v492_v51 }
  0xb0   : > { %1058 = vperm.xlu0 %2688, %v748_v42   ;;  %v589_v26 = vmul.f32 %v2234_v59, %v556_v52 }
  0xb2   : > { %v561_v54 = vpop.permute.xlu1 %560  ;;  %v597_v34 = vadd.f32 %v589_v26, %v520_v28  ;;  %v3039_v26 = vld [vmem:[%s3875_s1 + $0x4] ss:$0 sm:$0xff] }
  0xb3   : > { %v615_v55 = vpop.permute.xlu0 %614  ;;  %1063 = vperm.xlu1 %2689, %v1024_v53   ;;  %v590_v35 = vmul.f32 %v2234_v59, %v561_v54 }
  0xb4   : > { %v656_v2 = vmul.f32 %v2980_v62, %v615_v55 }
  0xb5   : > { %v598_v45 = vadd.f32 %v590_v35, %v521_v37 }
  0xb6   : > { %v620_v56 = vpop.permute.xlu1 %619  ;;  %v664_v12 = vadd.f32 %v656_v2, %v595_v7 }
  0xb7   : > { %v625_v57 = vpop.permute.xlu0 %624  ;;  %v657_v15 = vmul.f32 %v2980_v62, %v620_v56 }
  0xb8   : > { %v658_v29 = vmul.f32 %v2980_v62, %v625_v57 }
  0xb9   : > { %v665_v24 = vadd.f32 %v657_v15, %v596_v19 }
  0xba   : > { %v630_v60 = vpop.permute.xlu1 %629  ;;  %v666_v38 = vadd.f32 %v658_v29, %v597_v34 }
  0xbb   : > { %v497_v61 = vpop.permute.xlu0 %496  ;;  %v659_v41 = vmul.f32 %v2980_v62, %v630_v60 }
  0xbc   : > { %v522_v5 = vmul.f32 %v2233_v58, %v497_v61 }
  0xbd   : > { %v667_v50 = vadd.f32 %v659_v41, %v598_v45 }
  0xbe   : > { %v502_v3 = vpop.permute.xlu1 %501 }
  0xbf   : > { %v566_v4 = vpop.permute.xlu0 %565  ;;  %v523_v16 = vmul.f32 %v2233_v58, %v502_v3 }
  0xc0   : > { %v591_v6 = vmul.f32 %v2234_v59, %v566_v4 }
  0xc2   : > { %v599_v10 = vadd.f32 %v591_v6, %v522_v5  ;;  %v571_v13 = vpop.permute.xlu1 %570 }
  0xc3   : > { %v684_v14 = vpop.permute.xlu0 %683  ;;  %v592_v17 = vmul.f32 %v2234_v59, %v571_v13 }
  0xc4   : > { %v725_v18 = vmul.f32 %v2986_v8, %v684_v14 }
  0xc5   : > { %v600_v20 = vadd.f32 %v592_v17, %v523_v16 }
  0xc6   : > { %v2990_v21 = vadd.f32 %v725_v18, %v664_v12  ;;  %v689_v22 = vpop.permute.xlu1 %688 }
  0xc7   : > { %v507_v23 = vpop.permute.xlu0 %506  ;;  %v726_v25 = vmul.f32 %v2986_v8, %v689_v22 }
  0xc8   : > { %v524_v32 = vmul.f32 %v2233_v58, %v507_v23 }
  0xc9   : > { %v2994_v27 = vadd.f32 %v726_v25, %v665_v24 }
  0xca   : > { %v512_v30 = vpop.permute.xlu1 %511 }
  0xcb   : > { %v576_v31 = vpop.permute.xlu0 %575  ;;  %v525_v42 = vmul.f32 %v2233_v58, %v512_v30  ;;  %v3046_v30 = vld [vmem:[%s3875_s1 + $0x5] ss:$0 sm:$0xff] }
  0xcc   : > { %v593_v33 = vmul.f32 %v2234_v59, %v576_v31 }
  0xce   : > { %v601_v36 = vadd.f32 %v593_v33, %v524_v32  ;;  %v581_v39 = vpop.permute.xlu1 %580  ;;  %v3052_v32 = vld [vmem:[%s3875_s1 + $0x6] ss:$0 sm:$0xff] }
  0xcf   : > { %v694_v40 = vpop.permute.xlu0 %693  ;;  %v594_v43 = vmul.f32 %v2234_v59, %v581_v39 }
  0xd0   : > { %v727_v44 = vmul.f32 %v2986_v8, %v694_v40 }
  0xd1   : > { %v602_v46 = vadd.f32 %v594_v43, %v525_v42 }
  0xd2   : > { %v2999_v47 = vadd.f32 %v727_v44, %v666_v38  ;;  %v699_v48 = vpop.permute.xlu1 %698 }
  0xd3   : > { %v635_v49 = vpop.permute.xlu0 %634  ;;  %v728_v52 = vmul.f32 %v2986_v8, %v699_v48 }
  0xd4   : > { %v660_v51 = vmul.f32 %v2980_v62, %v635_v49 }
  0xd5   : > { %v3003_v53 = vadd.f32 %v728_v52, %v667_v50 }
  0xd6   : > { %v3005_v54 = vadd.f32 %v660_v51, %v599_v10  ;;  %v640_v55 = vpop.permute.xlu1 %639 }
  0xd7   : > { %v753_v56 = vpop.permute.xlu0 %752  ;;  %v661_v57 = vmul.f32 %v2980_v62, %v640_v55 }
  0xd8   : > { %v794_v31 = vmul.f32 %v3039_v26, %v753_v56 }
  0xd9   : > { %v3008_v58 = vadd.f32 %v661_v57, %v600_v20 }
  0xda   : > { %v758_v59 = vpop.permute.xlu1 %757  ;;  %v802_v37 = vadd.f32 %v794_v31, %v2990_v21 }
  0xdb   : > { %v645_v60 = vpop.permute.xlu0 %644  ;;  %v795_v38 = vmul.f32 %v3039_v26, %v758_v59 }
  0xdc   : > { %v662_v61 = vmul.f32 %v2980_v62, %v645_v60 }
  0xdd   : > { %v803_v21 = vadd.f32 %v795_v38, %v2994_v27  ;;  %v3087_v27 = vld [vmem:[%s3876_s2] ss:$0 sm:$0xff] }
  0xde   : > { %v3011_v63 = vadd.f32 %v662_v61, %v601_v36  ;;  %v650_v0 = vpop.permute.xlu1 %649  ;;  %v3060_v36 = vld [vmem:[%s3875_s1 + $0x7] ss:$0 sm:$0xff] }
  0xdf   : > { %v763_v2 = vpop.permute.xlu0 %762  ;;  %v663_v3 = vmul.f32 %v2980_v62, %v650_v0 }
  0xe0   : > { %v796_v45 = vmul.f32 %v3039_v26, %v763_v2 }
  0xe1   : > { %v3014_v4 = vadd.f32 %v663_v3, %v602_v46  ;;  %v3073_v46 = vld [vmem:[%s3875_s1 + $0x8] ss:$0 sm:$0xff] }
  0xe2   : > { %v768_v5 = vpop.permute.xlu1 %767  ;;  %v804_v60 = vadd.f32 %v796_v45, %v2999_v47 }
  0xe3   : > { %v3016_v6 = vpop.permute.xlu0 %703  ;;  %v797_v61 = vmul.f32 %v3039_v26, %v768_v5 }
  0xe4   : > { %v729_v38 = vmul.f32 %v2986_v8, %v3016_v6 }
  0xe6   : > { %v3018_v7 = vpop.permute.xlu1 %708 }
  0xe7   : > { %v822_v9 = vpop.permute.xlu0 %821 }
  0xe8   : > { %v863_v35 = vmul.f32 %v3046_v30, %v822_v9 }
  0xea   : > { %v827_v10 = vpop.permute.xlu1 %826  ;;  %v871_v42 = vadd.f32 %v863_v35, %v802_v37 }
  0xeb   : > { %v3020_v11 = vpop.permute.xlu0 %713  ;;  %v864_v43 = vmul.f32 %v3046_v30, %v827_v10 }
  0xed   : > { %v872_v55 = vadd.f32 %v864_v43, %v803_v21 }
  0xee   : > { %v3022_v12 = vpop.permute.xlu1 %718 }
  0xef   : > { %v832_v13 = vpop.permute.xlu0 %831 }
  0xf0   : > { %v865_v50 = vmul.f32 %v3046_v30, %v832_v13 }
  0xf2   : > { %v837_v14 = vpop.permute.xlu1 %836  ;;  %v873_v9 = vadd.f32 %v865_v50, %v804_v60 }
  0xf3   : > { %v3024_v15 = vpop.permute.xlu0 %772  ;;  %v866_v10 = vmul.f32 %v3046_v30, %v837_v14 }
  0xf4   : > { %v798_v45 = vmul.f32 %v3039_v26, %v3024_v15 }
  0xf6   : > { %v3026_v16 = vpop.permute.xlu1 %777 }
  0xf7   : > { %v891_v62 = vpop.permute.xlu0 %890  ;;  %v799_v50 = vmul.f32 %v3039_v26, %v3026_v16 }
  0xf8   : > { %v932_v39 = vmul.f32 %v3052_v32, %v891_v62 }
  0xfa   : > { %v896_v17 = vpop.permute.xlu1 %895  ;;  %v940_v48 = vadd.f32 %v932_v39, %v871_v42 }
  0xfb   : > { %v3028_v18 = vpop.permute.xlu0 %782  ;;  %v933_v49 = vmul.f32 %v3052_v32, %v896_v17 }
  0xfc   : > { %v800_v16 = vmul.f32 %v3039_v26, %v3028_v18 }
  0xfd   : > { %v941_v0 = vadd.f32 %v933_v49, %v872_v55  ;;  %v737_v49 = vadd.f32 %v729_v38, %v3005_v54 }
  0xfe   : > { %v3030_v19 = vpop.permute.xlu1 %787 }
  0xff   : > { %v901_v20 = vpop.permute.xlu0 %900 }
 0x100   : > { %v934_v2 = vmul.f32 %v3052_v32, %v901_v20 }
 0x102   : > { %v906_v22 = vpop.permute.xlu1 %905  ;;  %v942_v31 = vadd.f32 %v934_v2, %v873_v9 }
 0x103   : > { %v3032_v23 = vpop.permute.xlu0 %841  ;;  %v935_v35 = vmul.f32 %v3052_v32, %v906_v22  ;;  %v730_v22 = vmul.f32 %v2986_v8, %v3018_v7 }
 0x105   : > { %v738_v54 = vadd.f32 %v730_v22, %v3008_v58 }
 0x106   : > { %v3034_v24 = vpop.permute.xlu1 %846 }
 0x107   : > { %v960_v25 = vpop.permute.xlu0 %959  ;;  %v868_v2 = vmul.f32 %v3046_v30, %v3034_v24 }
 0x108   : > { %v1001_v44 = vmul.f32 %v3060_v36, %v960_v25 }
 0x10a   : > { %v965_v28 = vpop.permute.xlu1 %964  ;;  %v1009_v56 = vadd.f32 %v1001_v44, %v940_v48 }
 0x10b   : > { %v3041_v29 = vpop.permute.xlu0 %851  ;;  %v1002_v57 = vmul.f32 %v3060_v36, %v965_v28  ;;  %v805_v28 = vadd.f32 %v797_v61, %v3003_v53 }
 0x10c   : > { %v869_v58 = vmul.f32 %v3046_v30, %v3041_v29 }
 0x10d   : > { %v1010_v17 = vadd.f32 %v1002_v57, %v941_v0  ;;  %v874_v14 = vadd.f32 %v866_v10, %v805_v28 }
 0x10e   : > { %v3054_v33 = vpop.permute.xlu1 %856 }
 0x10f   : > { %v970_v34 = vpop.permute.xlu0 %969  ;;  %v943_v6 = vadd.f32 %v935_v35, %v874_v14 }
 0x110   : > { %v1003_v25 = vmul.f32 %v3060_v36, %v970_v34 }
 0x112   : > { %v975_v40 = vpop.permute.xlu1 %974  ;;  %v1011_v43 = vadd.f32 %v1003_v25, %v942_v31 }
 0x113   : > { %v3065_v41 = vpop.permute.xlu0 %910  ;;  %v1004_v34 = vmul.f32 %v3060_v36, %v975_v40  ;;  %v731_v40 = vmul.f32 %v2986_v8, %v3020_v11  ;;  %v732_v11 = vmul.f32 %v2986_v8, %v3022_v12  ;;  %v807_v8 = vadd.f32 %v799_v50, %v738_v54 }
 0x114   : > { %v936_v60 = vmul.f32 %v3052_v32, %v3065_v41 }
 0x115   : > { %v1012_v7 = vadd.f32 %v1004_v34, %v943_v6  ;;  %v739_v0 = vadd.f32 %v731_v40, %v3011_v63  ;;  %v801_v63 = vmul.f32 %v3039_v26, %v3030_v19  ;;  %v740_v29 = vadd.f32 %v732_v11, %v3014_v4 }
 0x116   : > { %v3078_v52 = vpop.permute.xlu1 %915  ;;  %v870_v19 = vmul.f32 %v3046_v30, %v3054_v33 }
 0x117   : > { %v1029_v51 = vpop.permute.xlu0 %1028  ;;  %v808_v10 = vadd.f32 %v800_v16, %v739_v0  ;;  %v937_v24 = vmul.f32 %v3052_v32, %v3078_v52  ;;  %v809_v38 = vadd.f32 %v801_v63, %v740_v29  ;;  %v1302_v0 = vld [vmem:[%s3877_s3 + $0x10] sm:$0xff] }
 0x118   : > { %v1070_v59 = vmul.f32 %v3073_v46, %v1029_v51 }
 0x11a   : > { %v1078_v3 = vadd.f32 %v1070_v59, %v1009_v56  ;;  %v1034_v13 = vpop.permute.xlu1 %1033  ;;  %v867_v56 = vmul.f32 %v3046_v30, %v3032_v23  ;;  %v806_v59 = vadd.f32 %v798_v45, %v737_v49 }
 0x11b   : > { %v921_v62 = vpop.permute.xlu0 %920  ;;  %v1071_v5 = vmul.f32 %v3073_v46, %v1034_v13 }
 0x11c   : > { %v1093_v47 = vadd.f32 %v3087_v27, %v1078_v3  ;;  %v875_v12 = vadd.f32 %v867_v56, %v806_v59 }
 0x11d   : > { %v1079_v20 = vadd.f32 %v1071_v5, %v1010_v17  ;;  %v938_v17 = vmul.f32 %v3052_v32, %v921_v62  ;;  %v877_v5 = vadd.f32 %v869_v58, %v808_v10 }
 0x11e   : > { %v1101_v37 = vmax.f32 %v1093_v47, 0.0  ;;  %v3098_v39 = vpop.permute.xlu1 %925  ;;  %v944_v13 = vadd.f32 %v936_v60, %v875_v12  ;;  %v876_v47 = vadd.f32 %v868_v2, %v807_v8  ;;  %v1305_v8 = vld [vmem:[%s3877_s3 + $0x28] sm:$0xff] }
 0x11f   : > { %v1039_v42 = vpop.permute.xlu0 %1038  ;;  %v1094_v44 = vadd.f32 %v3087_v27, %v1079_v20  ;;  %v946_v30 = vadd.f32 %v938_v17, %v877_v5  ;;  %v1307_v17 = vld [vmem:[%s3877_s3 + $0x38] sm:$0xff]  ;;  %v1308_v5 = vld [vmem:[%s3877_s3 + $0x40] sm:$0xff] }
 0x120   : > { %1110 = vst.msk [vmem:[#allocation3] sm:$0xff] %vm1109_vm1, %v1101_v37  ;;  %v1072_v53 = vmul.f32 %v3073_v46, %v1039_v42  ;;  %v945_v14 = vadd.f32 %v937_v24, %v876_v47  ;;  %v939_v42 = vmul.f32 %v3052_v32, %v3098_v39  ;;  %v1300_v32 = vld [vmem:[%s3877_s3] sm:$0xff]  ;;  %v1301_v39 = vld [vmem:[%s3877_s3 + $0x8] sm:$0xff] }
 0x121   : > { %v1102_v21 = vmax.f32 %v1094_v44, 0.0 }
 0x122   : > { %v1080_v48 = vadd.f32 %v1072_v53, %v1011_v43  ;;  %v1044_v51 = vpop.permute.xlu1 %1043  ;;  %v878_v43 = vadd.f32 %v870_v19, %v809_v38  ;;  %v1309_v19 = vld [vmem:[%s3877_s3 + $0x48] sm:$0xff] }
 0x123   : > { %v980_v55 = vpop.permute.xlu0 %979  ;;  %1111 = vst.msk [vmem:[#allocation3 + $0x8] sm:$0xff] %vm1109_vm1, %v1102_v21  ;;  %v1073_v57 = vmul.f32 %v3073_v46, %v1044_v51  ;;  %v2431_v51 = vpack.c.bf16 %v1301_v39, %v1300_v32 }
 0x124   : > { %v1095_v15 = vadd.f32 %v3087_v27, %v1080_v48  ;;  %v1005_v41 = vmul.f32 %v3060_v36, %v980_v55  ;;  %v947_v49 = vadd.f32 %v939_v42, %v878_v43  ;;  %v1313_v42 = vld [vmem:[%s3877_s3 + $0x68] sm:$0xff] }
 0x125   : > { %v1081_v61 = vadd.f32 %v1073_v57, %v1012_v7  ;;  %2432 = vmatprep.subr.bf16.mxu0 %v2431_v51 }
 0x126   : > { %v1103_v23 = vmax.f32 %v1095_v15, 0.0  ;;  %v985_v3 = vpop.permute.xlu1 %984  ;;  %v1013_v62 = vadd.f32 %v1005_v41, %v944_v13  ;;  %2434 = vmatpush3.bf16.msra.mxu0 %v2431_v51  ;;  %v1306_v13 = vld [vmem:[%s3877_s3 + $0x30] sm:$0xff] }
 0x127   : > { %v990_v9 = vpop.permute.xlu0 %989  ;;  %v1096_v18 = vadd.f32 %v3087_v27, %v1081_v61  ;;  %v1006_v28 = vmul.f32 %v3060_v36, %v985_v3  ;;  %v2443_v47 = vpack.c.bf16 %v1307_v17, %v1306_v13 }
 0x128   : > { %1112 = vst.msk [vmem:[#allocation3 + $0x10] sm:$0xff] %vm1109_vm1, %v1103_v23  ;;  %v1007_v37 = vmul.f32 %v3060_v36, %v990_v9  ;;  %v1304_v9 = vld [vmem:[%s3877_s3 + $0x20] sm:$0xff] }
 0x129   : > { %v1104_v25 = vmax.f32 %v1096_v18, 0.0  ;;  %v1014_v34 = vadd.f32 %v1006_v28, %v945_v14  ;;  %v2439_v18 = vpack.c.bf16 %v1305_v8, %v1304_v9  ;;  %v1312_v14 = vld [vmem:[%s3877_s3 + $0x60] sm:$0xff] }
 0x12a   : > { %v1118_v26 = vld [vmem:[#allocation3] ss:$2 sm:$0xff]  ;;  %v1126_v52 = vld [vmem:[#allocation3 + $0x1] ss:$2 sm:$0xff]  ;;  %v995_v4 = vpop.permute.xlu1 %994  ;;  %v1015_v45 = vadd.f32 %v1007_v37, %v946_v30  ;;  %v2455_v30 = vpack.c.bf16 %v1313_v42, %v1312_v14 }
 0x12b   : > { %v1049_v31 = vpop.permute.xlu0 %1048  ;;  %v1133_v35 = vmax.f32 %v1118_v26, %v1126_v52  ;;  %1113 = vst.msk [vmem:[#allocation3 + $0x18] sm:$0xff] %vm1109_vm1, %v1104_v25  ;;  %v1008_v44 = vmul.f32 %v3060_v36, %v995_v4  ;;  %v2447_v26 = vpack.c.bf16 %v1309_v19, %v1308_v5 }
 0x12c   : > { %v1074_v20 = vmul.f32 %v3073_v46, %v1049_v31 }
 0x12d   : > { %1143 = vst.msk [vmem:[#allocation4 + $0x3] sm:$0xff] %vm1109_vm1, %v1133_v35  ;;  %v1016_v7 = vadd.f32 %v1008_v44, %v947_v49  ;;  %v1310_v35 = vld [vmem:[%s3877_s3 + $0x50] sm:$0xff] }
 0x12e   : > { %v1082_v33 = vadd.f32 %v1074_v20, %v1013_v62  ;;  %v1054_v53 = vpop.permute.xlu1 %1053  ;;  %v1311_v62 = vld [vmem:[%s3877_s3 + $0x58] sm:$0xff] }
 0x12f   : > { %v1059_v22 = vpop.permute.xlu0 %1058  ;;  %v1075_v21 = vmul.f32 %v3073_v46, %v1054_v53  ;;  %v2451_v37 = vpack.c.bf16 %v1311_v62, %v1310_v35 }
 0x130   : > { %v1097_v6 = vadd.f32 %v3087_v27, %v1082_v33  ;;  %v1076_v48 = vmul.f32 %v3073_v46, %v1059_v22 }
 0x131   : > { %v1083_v36 = vadd.f32 %v1075_v21, %v1014_v34 }
 0x132   : > { %v1105_v40 = vmax.f32 %v1097_v6, 0.0  ;;  %v1084_v50 = vadd.f32 %v1076_v48, %v1015_v45  ;;  %v1120_v55 = vld [vmem:[#allocation3 + $0x10] ss:$2 sm:$0xff]  ;;  %v1128_v56 = vld [vmem:[#allocation3 + $0x11] ss:$2 sm:$0xff]  ;;  %v1064_v15 = vpop.permute.xlu1 %1063 }
 0x133   : > { %v1134_v57 = vmax.f32 %v1120_v55, %v1128_v56  ;;  %v1098_v54 = vadd.f32 %v3087_v27, %v1083_v36  ;;  %v1077_v16 = vmul.f32 %v3073_v46, %v1064_v15  ;;  %v1303_v46 = vld [vmem:[%s3877_s3 + $0x18] sm:$0xff] }
 0x134   : > { %1114 = vst.msk [vmem:[#allocation3 + $0x20] sm:$0xff] %vm1109_vm1, %v1105_v40  ;;  %v1099_v11 = vadd.f32 %v3087_v27, %v1084_v50  ;;  %v1151_v59 = vld [vmem:[#allocation4 + $0x1] sm:$0xff]  ;;  %v2435_v2 = vpack.c.bf16 %v1303_v46, %v1302_v0 }
 0x135   : > { %1144 = vst.msk [vmem:[#allocation4 + $0xb] sm:$0xff] %vm1109_vm1, %v1134_v57  ;;  %v1106_v60 = vmax.f32 %v1098_v54, 0.0  ;;  %v1085_v61 = vadd.f32 %v1077_v16, %v1016_v7  ;;  %1179 = vrot.lane.b32.xlu0 %v1151_v59, %s3860_s30  ;;  %v1155_v3 = vld [vmem:[#allocation4 + $0x2] sm:$0xff] }
 0x136   : > { %v1107_v23 = vmax.f32 %v1099_v11, 0.0  ;;  %2436 = vmatprep.subr.bf16.mxu0 %v2435_v2 }
 0x137   : > { %1115 = vst.msk [vmem:[#allocation3 + $0x28] sm:$0xff] %vm1109_vm1, %v1106_v60  ;;  %v1100_v58 = vadd.f32 %v3087_v27, %v1085_v61  ;;  %2438 = vmatpush3.bf16.msra.mxu0 %v2435_v2  ;;  %v1159_v27 = vld [vmem:[#allocation4 + $0x3] sm:$0xff] }
 0x138   : > { %1116 = vst.msk [vmem:[#allocation3 + $0x30] sm:$0xff] %vm1109_vm1, %v1107_v23  ;;  %2440 = vmatprep.subr.bf16.mxu0 %v2439_v18  ;;  %v1147_v60 = vld [vmem:[#allocation4] sm:$0xff] }
 0x139   : > { %v1108_v12 = vmax.f32 %v1100_v58, 0.0  ;;  %1195 = vrot.lane.b32.xlu0 %v1155_v3, %s3858_s16  ;;  %s3881_s16 = smov 96  }
 0x13b   : > { %1117 = vst.msk [vmem:[#allocation3 + $0x38] sm:$0xff] %vm1109_vm1, %v1108_v12  ;;  %2442 = vmatpush3.bf16.msra.mxu0 %v2439_v18 }
 0x13c   : > { %v1152_v41 = vld [vmem:[#allocation4 + $0x9] sm:$0xff]  ;;  %2444 = vmatprep.subr.bf16.mxu0 %v2443_v47 }
 0x13d   : > { %1211 = vrot.lane.b32.xlu0 %v1159_v27, %s3862_s20  ;;  %1181 = vrot.lane.b32.xlu1 %v1152_v41, %s3860_s30  ;;  %v1163_v29 = vld [vmem:[#allocation4 + $0x4] sm:$0xff]  ;;  %s2775_s20 = smov 80  }
 0x13e   : > { %v1122_v10 = vld [vmem:[#allocation3 + $0x20] ss:$2 sm:$0xff]  ;;  %v1130_v63 = vld [vmem:[#allocation3 + $0x21] ss:$2 sm:$0xff] }
 0x13f   : > { %v1135_v24 = vmax.f32 %v1122_v10, %v1130_v63  ;;  %v1156_v25 = vld [vmem:[#allocation4 + $0xa] sm:$0xff]  ;;  %2446 = vmatpush3.bf16.msra.mxu0 %v2443_v47 }
 0x140   : > { %v1160_v31 = vld [vmem:[#allocation4 + $0xb] sm:$0xff]  ;;  %2448 = vmatprep.subr.bf16.mxu0 %v2447_v26 }
 0x141   : > { %1145 = vst.msk [vmem:[#allocation4 + $0x13] sm:$0xff] %vm1109_vm1, %v1135_v24  ;;  %1227 = vrot.lane.b32.xlu0 %v1163_v29, %s3864_s0  ;;  %1197 = vrot.lane.b32.xlu1 %v1156_v25, %s3878_s21  ;;  %v1167_v33 = vld [vmem:[#allocation4 + $0x5] sm:$0xff] }
 0x142   : > { %v1124_v52 = vld [vmem:[#allocation3 + $0x30] ss:$2 sm:$0xff]  ;;  %v1132_v28 = vld [vmem:[#allocation3 + $0x31] ss:$2 sm:$0xff]  ;;  %v1171_v53 = vld [vmem:[#allocation4 + $0x6] sm:$0xff] }
 0x143   : > { %v1136_v4 = vmax.f32 %v1124_v52, %v1132_v28  ;;  %2450 = vmatpush3.bf16.msra.mxu0 %v2447_v26  ;;  %v1148_v58 = vld [vmem:[#allocation4 + $0x8] sm:$0xff] }
 0x144   : > { %2452 = vmatprep.subr.bf16.mxu0 %v2451_v37 }
 0x145   : > { %1213 = vrot.lane.b32.xlu1 %v1160_v31, %s3879_s23  ;;  %1146 = vst.msk [vmem:[#allocation4 + $0x1b] sm:$0xff] %vm1109_vm1, %v1136_v4 }
 0x147   : > { %2454 = vmatpush3.bf16.msra.mxu0 %v2451_v37 }
 0x148   : > { %v1164_v20 = vld [vmem:[#allocation4 + $0xc] sm:$0xff]  ;;  %2456 = vmatprep.subr.bf16.mxu0 %v2455_v30 }
 0x149   : > { %v1153_v38 = vld [vmem:[#allocation4 + $0x11] sm:$0xff]  ;;  %1229 = vrot.lane.b32.xlu0 %v1164_v20, %s3864_s0 }
 0x14a   : > { %1183 = vrot.lane.b32.xlu1 %v1153_v38, %s3880_s24  ;;  %v1157_v34 = vld [vmem:[#allocation4 + $0x12] sm:$0xff] }
 0x14b   : > { %2458 = vmatpush3.bf16.msra.mxu0 %v2455_v30  ;;  %v1168_v44 = vld [vmem:[#allocation4 + $0xd] sm:$0xff] }
 0x14c   : > { %v1154_v43 = vld [vmem:[#allocation4 + $0x19] sm:$0xff]  ;;  %v1172_v6 = vld [vmem:[#allocation4 + $0xe] sm:$0xff] }
 0x14d   : > { %1185 = vrot.lane.b32.xlu0 %v1154_v43, %s3880_s24  ;;  %v1158_v22 = vld [vmem:[#allocation4 + $0x1a] sm:$0xff]  ;;  %v1149_v5 = vld [vmem:[#allocation4 + $0x10] sm:$0xff] }
 0x14e   : > { %1243 = vrot.lane.b32.xlu1 %v1167_v33, %s2775_s20  ;;  %v1161_v45 = vld [vmem:[#allocation4 + $0x13] sm:$0xff]  ;;  %v1162_v21 = vld [vmem:[#allocation4 + $0x1b] sm:$0xff] }
 0x14f   : > { %v1165_v48 = vld [vmem:[#allocation4 + $0x14] sm:$0xff]  ;;  %v1166_v49 = vld [vmem:[#allocation4 + $0x1c] sm:$0xff] }
 0x150   : > { %v1169_v32 = vld [vmem:[#allocation4 + $0x15] sm:$0xff]  ;;  %v1170_v39 = vld [vmem:[#allocation4 + $0x1d] sm:$0xff] }
 0x151   : > { %1245 = vrot.lane.b32.xlu0 %v1168_v44, %s2775_s20  ;;  %v1173_v40 = vld [vmem:[#allocation4 + $0x16] sm:$0xff]  ;;  %v1174_v36 = vld [vmem:[#allocation4 + $0x1e] sm:$0xff] }
 0x152   : > { %1199 = vrot.lane.b32.xlu1 %v1157_v34, %s3878_s21  ;;  %v1150_v31 = vld [vmem:[#allocation4 + $0x18] sm:$0xff] }
 0x155   : > { %1201 = vrot.lane.b32.xlu0 %v1158_v22, %s3878_s21  ;;  %v1507_v22 = vld [vmem:[%s3849_s5 + $0x8] sm:$0xff] }
 0x156   : > { %1259 = vrot.lane.b32.xlu1 %v1171_v53, %s3866_s15  ;;  %v1506_v53 = vld [vmem:[%s3849_s5] sm:$0xff] }
 0x159   : > { %1261 = vrot.lane.b32.xlu0 %v1172_v6, %s3866_s15  ;;  %v2777_v6 = vmov 0.0|0.0  }
 0x15a   : > { %1215 = vrot.lane.b32.xlu1 %v1161_v45, %s3879_s23  ;;  %v1508_v45 = vld [vmem:[%s3849_s5 + $0x10] sm:$0xff]  ;;  %2459 = vmatprep.subr.bf16.mxu1 %v2777_v6 }
 0x15d   : > { %1231 = vrot.lane.b32.xlu0 %v1165_v48, %s3864_s0  ;;  %v1509_v48 = vld [vmem:[%s3849_s5 + $0x18] sm:$0xff] }
 0x15e   : > { %1217 = vrot.lane.b32.xlu1 %v1162_v21, %s3879_s23  ;;  %v2460_v21 = vpack.c.bf16 %v1507_v22, %v1506_v53 }
 0x160   : > { %2461 = vmatpush1.bf16.msra.mxu1 %v2460_v21 }
 0x161   : > { %1247 = vrot.lane.b32.xlu0 %v1169_v32, %s2775_s20  ;;  %2462 = vmatprep.subr.bf16.mxu1 %v2777_v6  ;;  %v1510_v32 = vld [vmem:[%s3849_s5 + $0x20] sm:$0xff] }
 0x162   : > { %1233 = vrot.lane.b32.xlu1 %v1166_v49, %s3864_s0  ;;  %v2463_v49 = vpack.c.bf16 %v1509_v48, %v1508_v45 }
 0x164   : > { %2464 = vmatpush1.bf16.msra.mxu1 %v2463_v49 }
 0x165   : > { %1263 = vrot.lane.b32.xlu0 %v1173_v40, %s3866_s15  ;;  %2465 = vmatprep.subr.bf16.mxu1 %v2777_v6 }
 0x166   : > { %1249 = vrot.lane.b32.xlu1 %v1170_v39, %s2775_s20  ;;  %v1511_v39 = vld [vmem:[%s3849_s5 + $0x28] sm:$0xff]  ;;  %s2254_s20 = sshll.u32 %s2871_s29, 4  ;;  %s2779_s29 = smov [#allocation11]  }
 0x167   : > { %v2466_v40 = vpack.c.bf16 %v1511_v39, %v1510_v32  ;;  %s3802_s2 = scalar_lea.hbm %s3857_s13, %s2254_s20  ;;  %s2709_s1 = sshll.u32 %s2779_s29, 4  ;;  %s2710_s1 = int_to_ptr.vmem [resolvable:$false] %s2709_s1 }
 0x169   : > { %2467 = vmatpush1.bf16.msra.mxu1 %v2466_v40 }
 0x16a   : > { %1265 = vrot.lane.b32.xlu1 %v1174_v36, %s3866_s15  ;;  %v1512_v36 = vld [vmem:[%s3849_s5 + $0x30] sm:$0xff]  ;;  %2468 = vmatprep.subr.bf16.mxu1 %v2777_v6 }
 0x1a7   : > { %v1180_v50 = vpop.permute.xlu0 %1179 }
 0x1a8   : > { %v1271_v23 = vsel %vm1109_vm1, %v1147_v60, %v1180_v50  ;;  %v1513_v50 = vld [vmem:[%s3849_s5 + $0x38] sm:$0xff]  ;;  %v1520_v60 = vld [vmem:[%s3849_s5 + $0x70] sm:$0xff] }
 0x1ab   : > { %v1196_v51 = vpop.permute.xlu0 %1195 }
 0x1ac   : > { %v1276_v46 = vsel %vm1275_vm3, %v1271_v23, %v1196_v51  ;;  %v2469_v51 = vpack.c.bf16 %v1513_v50, %v1512_v36  ;;  %v1521_v23 = vld [vmem:[%s3849_s5 + $0x78] sm:$0xff] }
 0x1ae   : > { %2470 = vmatpush1.bf16.msra.mxu1 %v2469_v51 }
 0x1af   : > { %v1182_v55 = vpop.permute.xlu1 %1181  ;;  %v1212_v56 = vpop.permute.xlu0 %1211  ;;  %2471 = vmatprep.subr.bf16.mxu1 %v2777_v6 }
 0x1b0   : > { %v1281_v2 = vsel %vm1280_vm5, %v1276_v46, %v1212_v56  ;;  %v1272_v9 = vsel %vm1109_vm1, %v1148_v58, %v1182_v55  ;;  %v1514_v55 = vld [vmem:[%s3849_s5 + $0x40] sm:$0xff]  ;;  %v1515_v56 = vld [vmem:[%s3849_s5 + $0x48] sm:$0xff] }
 0x1b3   : > { %v1198_v7 = vpop.permute.xlu1 %1197  ;;  %v1228_v15 = vpop.permute.xlu0 %1227 }
 0x1b4   : > { %v1286_v3 = vsel %vm1285_vm4, %v1281_v2, %v1228_v15  ;;  %v1277_v27 = vsel %vm1275_vm3, %v1272_v9, %v1198_v7  ;;  %v2472_v7 = vpack.c.bf16 %v1515_v56, %v1514_v55  ;;  %v1516_v15 = vld [vmem:[%s3849_s5 + $0x50] sm:$0xff] }
 0x1b6   : > { %2473 = vmatpush1.bf16.msra.mxu1 %v2472_v7 }
 0x1b7   : > { %v1214_v57 = vpop.permute.xlu1 %1213  ;;  %2474 = vmatprep.subr.bf16.mxu1 %v2777_v6 }
 0x1b8   : > { %v1282_v10 = vsel %vm1280_vm5, %v1277_v27, %v1214_v57  ;;  %v1517_v57 = vld [vmem:[%s3849_s5 + $0x58] sm:$0xff]  ;;  %v1524_v27 = vld [vmem:[%s3849_s5 + $0x90] sm:$0xff] }
 0x1bb   : > { %v1230_v11 = vpop.permute.xlu0 %1229 }
 0x1bc   : > { %v1184_v54 = vpop.permute.xlu1 %1183  ;;  %v1287_v63 = vsel %vm1285_vm4, %v1282_v10, %v1230_v11  ;;  %v1518_v11 = vld [vmem:[%s3849_s5 + $0x60] sm:$0xff]  ;;  %v1525_v10 = vld [vmem:[%s3849_s5 + $0x98] sm:$0xff] }
 0x1bd   : > { %v1273_v19 = vsel %vm1109_vm1, %v1149_v5, %v1184_v54  ;;  %v2475_v54 = vpack.c.bf16 %v1517_v57, %v1516_v15 }
 0x1bf   : > { %v1186_v59 = vpop.permute.xlu0 %1185  ;;  %2476 = vmatpush1.bf16.msra.mxu1 %v2475_v54 }
 0x1c0   : > { %v1244_v16 = vpop.permute.xlu1 %1243  ;;  %v1274_v62 = vsel %vm1109_vm1, %v1150_v31, %v1186_v59  ;;  %2477 = vmatprep.subr.bf16.mxu1 %v2777_v6 }
 0x1c1   : > { %v1291_v8 = vsel %vm1290_vm6, %v1286_v3, %v1244_v16  ;;  %v1519_v16 = vld [vmem:[%s3849_s5 + $0x68] sm:$0xff] }
 0x1c2   : > { %v2478_v59 = vpack.c.bf16 %v1519_v16, %v1518_v11 }
 0x1c3   : > { %v1246_v0 = vpop.permute.xlu0 %1245 }
 0x1c4   : > { %v1200_v61 = vpop.permute.xlu1 %1199  ;;  %v1292_v24 = vsel %vm1290_vm6, %v1287_v63, %v1246_v0  ;;  %2479 = vmatpush1.bf16.msra.mxu1 %v2478_v59  ;;  %v2243_v0 = vld [vmem:[%s3848_s4] ss:$0 sm:$0xff] }
 0x1c5   : > { %v1278_v28 = vsel %vm1275_vm3, %v1273_v19, %v1200_v61  ;;  %v2481_v61 = vpack.c.bf16 %v1521_v23, %v1520_v60  ;;  %2480 = vmatprep.subr.bf16.mxu1 %v2777_v6 }
 0x1c7   : > { %v1202_v18 = vpop.permute.xlu0 %1201 }
 0x1c8   : > { %v1260_v12 = vpop.permute.xlu1 %1259  ;;  %v1279_v14 = vsel %vm1275_vm3, %v1274_v62, %v1202_v18  ;;  %2482 = vmatpush1.bf16.msra.mxu1 %v2481_v61  ;;  %v1523_v18 = vld [vmem:[%s3849_s5 + $0x88] sm:$0xff] }
 0x1c9   : > { %v1296_v41 = vsel %vm1295_vm7, %v1291_v8, %v1260_v12  ;;  %2483 = vmatprep.subr.bf16.mxu1 %v2777_v6  ;;  %v1522_v12 = vld [vmem:[%s3849_s5 + $0x80] sm:$0xff] }
 0x1ca   : > { %2414 = vmatprep.mubr.msk.f32.mxu0 %vm1321_vm8, %v1296_v41  ;;  %v2484_v41 = vpack.c.bf16 %v1523_v18, %v1522_v12 }
 0x1cb   : > { %v1262_v13 = vpop.permute.xlu0 %1261 }
 0x1cc   : > { %v1216_v29 = vpop.permute.xlu1 %1215  ;;  %v1297_v17 = vsel %vm1295_vm7, %v1292_v24, %v1262_v13  ;;  %2485 = vmatpush1.bf16.msra.mxu1 %v2484_v41 }
 0x1cd   : > { %2415 = vmatmul.mubr.msk.f32.vlgmr.msra.gmra.mrb[0].mxu0 %vm1321_vm8, %v1297_v17  ;;  %v1283_v4 = vsel %vm1280_vm5, %v1278_v28, %v1216_v29  ;;  %v2487_v29 = vpack.c.bf16 %v1525_v10, %v1524_v27  ;;  %2486 = vmatprep.subr.bf16.mxu1 %v2777_v6  ;;  %v1526_v17 = vld [vmem:[%s3849_s5 + $0xa0] sm:$0xff]  ;;  %v1528_v28 = vld [vmem:[%s3849_s5 + $0xb0] sm:$0xff] }
 0x1cf   : > { %v1232_v47 = vpop.permute.xlu0 %1231 }
 0x1d0   : > { %v1218_v25 = vpop.permute.xlu1 %1217  ;;  %v1288_v35 = vsel %vm1285_vm4, %v1283_v4, %v1232_v47  ;;  %2488 = vmatpush1.bf16.msra.mxu1 %v2487_v29  ;;  %v1529_v4 = vld [vmem:[%s3849_s5 + $0xb8] sm:$0xff]  ;;  %v1689_v29 = vld [vmem:[%s3851_s7 + $0x108] sm:$0xff] }
 0x1d1   : > { %v1284_v30 = vsel %vm1280_vm5, %v1279_v14, %v1218_v25  ;;  %v1527_v25 = vld [vmem:[%s3849_s5 + $0xa8] sm:$0xff]  ;;  %2489 = vmatprep.subr.bf16.mxu1 %v2777_v6  ;;  %v2493_v62 = vpack.c.bf16 %v1529_v4, %v1528_v28  ;;  %v1530_v14 = vld [vmem:[%s3849_s5 + $0xc0] sm:$0xff] }
 0x1d2   : > { %v1656_v4 = vld [vmem:[%s3851_s7] sm:$0xff] }
 0x1d3   : > { %v1248_v52 = vpop.permute.xlu0 %1247 }
 0x1d4   : > { %v1234_v26 = vpop.permute.xlu1 %1233  ;;  %v1293_v37 = vsel %vm1290_vm6, %v1288_v35, %v1248_v52 }
 0x1d5   : > { %v1289_v33 = vsel %vm1285_vm4, %v1284_v30, %v1234_v26  ;;  %v2490_v26 = vpack.c.bf16 %v1527_v25, %v1526_v17  ;;  %v1531_v30 = vld [vmem:[%s3849_s5 + $0xc8] sm:$0xff]  ;;  %v1691_v25 = vld [vmem:[%s3851_s7 + $0x118] sm:$0xff] }
 0x1d7   : > { %v1264_v38 = vpop.permute.xlu0 %1263  ;;  %2491 = vmatpush1.bf16.msra.mxu1 %v2490_v26  ;;  %v1692_v26 = vld [vmem:[%s3851_s7 + $0x120] sm:$0xff] }
 0x1d8   : > { %v1250_v20 = vpop.permute.xlu1 %1249  ;;  %v1298_v42 = vsel %vm1295_vm7, %v1293_v37, %v1264_v38  ;;  %2492 = vmatprep.subr.bf16.mxu1 %v2777_v6 }
 0x1d9   : > { %2417 = vmatprep.mubr.msk.f32.mxu0 %vm1321_vm8, %v1298_v42  ;;  %v1294_v43 = vsel %vm1290_vm6, %v1289_v33, %v1250_v20  ;;  %v2496_v33 = vpack.c.bf16 %v1531_v30, %v1530_v14  ;;  %v1676_v30 = vld [vmem:[%s3851_s7 + $0xa0] sm:$0xff] }
 0x1db   : > { %2494 = vmatpush1.bf16.msra.mxu1 %v2493_v62  ;;  %v1675_v62 = vld [vmem:[%s3851_s7 + $0x98] sm:$0xff] }
 0x1dc   : > { %v1266_v34 = vpop.permute.xlu1 %1265  ;;  %2495 = vmatprep.subr.bf16.mxu1 %v2777_v6 }
 0x1dd   : > { %v1299_v44 = vsel %vm1295_vm7, %v1294_v43, %v1266_v34  ;;  %v1532_v43 = vld [vmem:[%s3849_s5 + $0xd0] sm:$0xff]  ;;  %v1533_v34 = vld [vmem:[%s3849_s5 + $0xd8] sm:$0xff] }
 0x1de   : > { %2418 = vmatmul.mubr.msk.f32.gmra.mrb[2].mxu0 %vm1321_vm8, %v1299_v44  ;;  %v2499_v44 = vpack.c.bf16 %v1533_v34, %v1532_v43  ;;  %v1694_v43 = vld [vmem:[%s3851_s7 + $0x130] sm:$0xff]  ;;  %v1695_v34 = vld [vmem:[%s3851_s7 + $0x138] sm:$0xff] }
 0x1df   : > { %2497 = vmatpush1.bf16.msra.mxu1 %v2496_v33  ;;  %v1677_v33 = vld [vmem:[%s3851_s7 + $0xa8] sm:$0xff] }
 0x1e0   : > { %2498 = vmatprep.subr.bf16.mxu1 %v2777_v6 }
 0x1e3   : > { %2500 = vmatpush1.bf16.msra.mxu1 %v2499_v44 }
 0x1e4   : > { %2533 = vmatprep.subr.bf16.mxu1 %v2777_v6 }
 0x2a0   : > { %v2416_v46 = vpop.f32.mrb[0].mxu0 }
 0x2a1   : > { %v1406_v2 = vadd.f32 %v2416_v46, %v2243_v0  ;;  %v1400_v58 = vpop.f32.mrb[1].mxu0 }
 0x2a2   : > { %v1401_v3 = vadd.f32 %v2243_v0, %v1400_v58 }
 0x2a3   : > { %v1420_v9 = vmax.f32 %v1406_v2, 0.0 }
 0x2a4   : > { %v1419_v8 = vmax.f32 %v1401_v3, 0.0 }
 0x2a5   : > { %1424 = vst.msk [vmem:[#allocation5 + $0x8] sm:$0xff] %vm1275_vm3, %v1420_v9 }
 0x2a6   : > { %1423 = vst.msk [vmem:[#allocation5] sm:$0xff] %vm1275_vm3, %v1419_v8 }
 0x2ad   : > { %v1427_v63 = vld [vmem:[#allocation5] ss:$2 sm:$0xff]  ;;  %v1431_v24 = vld [vmem:[#allocation5 + $0x1] ss:$2 sm:$0xff] }
 0x2ae   : > { %v1434_v13 = vmax.f32 %v1427_v63, %v1431_v24  ;;  %v1688_v24 = vld [vmem:[%s3851_s7 + $0x100] sm:$0xff] }
 0x2af   : > { %v2534_v17 = vpack.c.bf16 %v1689_v29, %v1688_v24  ;;  %v1668_v24 = vld [vmem:[%s3851_s7 + $0x60] sm:$0xff]  ;;  %v1669_v29 = vld [vmem:[%s3851_s7 + $0x68] sm:$0xff] }
 0x2b0   : > { %1440 = vst.msk [vmem:[#allocation6 + $0x3] sm:$0xff] %vm1275_vm3, %v1434_v13  ;;  %v1690_v13 = vld [vmem:[%s3851_s7 + $0x110] sm:$0xff] }
 0x2b1   : > { %v2419_v47 = vpop.f32.mrb[2].mxu0 }
 0x2b2   : > { %v1416_v5 = vadd.f32 %v2419_v47, %v2243_v0  ;;  %v1410_v19 = vpop.f32.mrb[3].mxu0  ;;  %v2537_v47 = vpack.c.bf16 %v1691_v25, %v1690_v13  ;;  %v1705_v25 = vld [vmem:[%s3851_s7 + $0x188] sm:$0xff] }
 0x2b3   : > { %v1411_v52 = vadd.f32 %v2243_v0, %v1410_v19  ;;  %v1673_v19 = vld [vmem:[%s3851_s7 + $0x88] sm:$0xff] }
 0x2b4   : > { %v1422_v31 = vmax.f32 %v1416_v5, 0.0  ;;  %v1672_v5 = vld [vmem:[%s3851_s7 + $0x80] sm:$0xff] }
 0x2b5   : > { %v1421_v35 = vmax.f32 %v1411_v52, 0.0  ;;  %v1693_v52 = vld [vmem:[%s3851_s7 + $0x128] sm:$0xff]  ;;  %v2501_v28 = vpack.c.bf16 %v1673_v19, %v1672_v5  ;;  %v1706_v19 = vld [vmem:[%s3851_s7 + $0x190] sm:$0xff] }
 0x2b6   : > { %1426 = vst.msk [vmem:[#allocation5 + $0x18] sm:$0xff] %vm1275_vm3, %v1422_v31  ;;  %v1657_v31 = vld [vmem:[%s3851_s7 + $0x8] sm:$0xff]  ;;  %v2540_v14 = vpack.c.bf16 %v1693_v52, %v1692_v26  ;;  %v1707_v26 = vld [vmem:[%s3851_s7 + $0x198] sm:$0xff] }
 0x2b7   : > { %1425 = vst.msk [vmem:[#allocation5 + $0x10] sm:$0xff] %vm1275_vm3, %v1421_v35  ;;  %v1448_v37 = vld [vmem:[#allocation6 + $0x3] sm:$0xff]  ;;  %v1674_v35 = vld [vmem:[%s3851_s7 + $0x90] sm:$0xff]  ;;  %2502 = vmatprep.subr.bf16.mxu0 %v2501_v28  ;;  %v2561_v52 = vpack.c.bf16 %v1707_v26, %v1706_v19 }
 0x2b8   : > { %1474 = vrot.lane.b32.xlu0 %v1448_v37, %s3881_s16  ;;  %v1444_v22 = vld [vmem:[#allocation6 + $0x1] sm:$0xff]  ;;  %v2503_v37 = vpack.c.bf16 %v1657_v31, %v1656_v4  ;;  %v1709_v4 = vld [vmem:[%s3851_s7 + $0x1a8] sm:$0xff]  ;;  %v1879_v26 = vld [vmem:[%s3853_s9 + $0x30] sm:$0xff] }
 0x2b9   : > { %v1446_v32 = vld [vmem:[#allocation6 + $0x2] sm:$0xff] }
 0x2ba   : > { %v1442_v23 = vld [vmem:[#allocation6] sm:$0xff]  ;;  %2504 = vmatpush3.bf16.msra.mxu0 %v2503_v37  ;;  %v1708_v28 = vld [vmem:[%s3851_s7 + $0x1a0] sm:$0xff] }
 0x2bb   : > { %v2564_v31 = vpack.c.bf16 %v1709_v4, %v1708_v28  ;;  %v1897_v4 = vld [vmem:[%s3853_s9 + $0xc0] sm:$0xff] }
 0x2be   : > { %v1429_v20 = vld [vmem:[#allocation5 + $0x10] ss:$2 sm:$0xff]  ;;  %v1433_v38 = vld [vmem:[#allocation5 + $0x11] ss:$2 sm:$0xff] }
 0x2bf   : > { %v1435_v42 = vmax.f32 %v1429_v20, %v1433_v38  ;;  %v2505_v20 = vpack.c.bf16 %v1675_v62, %v1674_v35  ;;  %v1658_v38 = vld [vmem:[%s3851_s7 + $0x10] sm:$0xff]  ;;  %v1711_v62 = vld [vmem:[%s3851_s7 + $0x1b8] sm:$0xff] }
 0x2c0   : > { %v1710_v35 = vld [vmem:[%s3851_s7 + $0x1b0] sm:$0xff] }
 0x2c1   : > { %1441 = vst.msk [vmem:[#allocation6 + $0xb] sm:$0xff] %vm1275_vm3, %v1435_v42  ;;  %v1659_v42 = vld [vmem:[%s3851_s7 + $0x18] sm:$0xff]  ;;  %2506 = vmatprep.subr.bf16.mxu0 %v2505_v20  ;;  %v2567_v37 = vpack.c.bf16 %v1711_v62, %v1710_v35  ;;  %v2248_v20 = vld [vmem:[%s3850_s6] ss:$0 sm:$0xff] }
 0x2c2   : > { %v2507_v44 = vpack.c.bf16 %v1659_v42, %v1658_v38  ;;  %v1881_v35 = vld [vmem:[%s3853_s9 + $0x40] sm:$0xff] }
 0x2c4   : > { %2508 = vmatpush3.bf16.msra.mxu0 %v2507_v44 }
 0x2c8   : > { %v1452_v53 = vld [vmem:[#allocation6 + $0x5] sm:$0xff]  ;;  %v1453_v40 = vld [vmem:[#allocation6 + $0xd] sm:$0xff] }
 0x2c9   : > { %v1445_v45 = vld [vmem:[#allocation6 + $0x9] sm:$0xff]  ;;  %1482 = vrot.lane.b32.xlu1 %v1452_v53, %s3878_s21  ;;  %v2509_v53 = vpack.c.bf16 %v1677_v33, %v1676_v30 }
 0x2ca   : > { %v2690_v21 = vpack.i.bf16 %v1445_v45, %v1444_v22  ;;  %v1447_v48 = vld [vmem:[#allocation6 + $0xa] sm:$0xff] }
 0x2cb   : > { %v1454_v49 = vld [vmem:[#allocation6 + $0x6] sm:$0xff]  ;;  %v2695_v39 = vpack.i.bf16 %v1447_v48, %v1446_v32  ;;  %v1455_v36 = vld [vmem:[#allocation6 + $0xe] sm:$0xff]  ;;  %2510 = vmatprep.subr.bf16.mxu0 %v2509_v53 }
 0x2cc   : > { %2691 = vrot.lane.b32.xlu0 %v2690_v21, %s3878_s21  ;;  %v1449_v50 = vld [vmem:[#allocation6 + $0xb] sm:$0xff]  ;;  %v1678_v21 = vld [vmem:[%s3851_s7 + $0xb0] sm:$0xff]  ;;  %v1679_v48 = vld [vmem:[%s3851_s7 + $0xb8] sm:$0xff] }
 0x2cd   : > { %1490 = vrot.lane.b32.xlu1 %v1454_v49, %s3882_s22  ;;  %v1450_v7 = vld [vmem:[#allocation6 + $0x4] sm:$0xff]  ;;  %v1451_v46 = vld [vmem:[#allocation6 + $0xc] sm:$0xff]  ;;  %v2543_v49 = vpack.c.bf16 %v1695_v34, %v1694_v43 }
 0x2ce   : > { %v1443_v12 = vld [vmem:[#allocation6 + $0x8] sm:$0xff]  ;;  %v1661_v45 = vld [vmem:[%s3851_s7 + $0x28] sm:$0xff] }
 0x2cf   : > { %v1660_v22 = vld [vmem:[%s3851_s7 + $0x20] sm:$0xff] }
 0x2d0   : > { %2696 = vrot.lane.b32.xlu0 %v2695_v39, %s3882_s22  ;;  %v1696_v32 = vld [vmem:[%s3851_s7 + $0x140] sm:$0xff]  ;;  %v1697_v39 = vld [vmem:[%s3851_s7 + $0x148] sm:$0xff] }
 0x2d1   : > { %1484 = vrot.lane.b32.xlu1 %v1453_v40, %s3878_s21  ;;  %v2511_v40 = vpack.c.bf16 %v1661_v45, %v1660_v22  ;;  %v1686_v45 = vld [vmem:[%s3851_s7 + $0xf0] sm:$0xff]  ;;  %s431_s21 = sand.u32 1, %s2759_s26  }
 0x2d2   : > { %s432_s0 = scalar_lea.vmem [#allocation11], %s431_s21  ;;  %s2160_s24 = scalar_lea.sflag [#allocation12], %s431_s21 }
 0x2d3   : > { %2512 = vmatpush3.bf16.msra.mxu0 %v2511_v40  ;;  %s2172_s15 = sshll.u32 %s432_s0, 4  ;;  %s3804_s15 = int_to_ptr.vmem [resolvable:$true] %s2172_s15 }
 0x2d4   : > { %1492 = vrot.lane.b32.xlu0 %v1455_v36, %s3882_s22  ;;  %v2513_v36 = vpack.c.bf16 %v1679_v48, %v1678_v21  ;;  %v1687_v48 = vld [vmem:[%s3851_s7 + $0xf8] sm:$0xff]  ;;  %s2705_s3 = scalar_lea.vmem %s3804_s15, 16  ;;  %p2712_p0 = scmp.lt.s32.totalorder %s3804_s15, %s2710_s1 }
 0x2d5   : > { %1476 = vrot.lane.b32.xlu1 %v1449_v50, %s3881_s16  ;;  %v1662_v50 = vld [vmem:[%s3851_s7 + $0x30] sm:$0xff]  ;;  %p2706_p11 = scmp.ne.s32.totalorder %s3804_s15, %s2705_s3  ;;  %s2711_s16 = scalar_lea.vmem %s2710_s1, 32 }
 0x2d6   : > { %2514 = vmatprep.subr.bf16.mxu0 %v2513_v36  ;;  %p2713_p1 = scmp.lt.s32.totalorder %s2711_s16, %s2705_s3 }
 0x2d7   : > { %p2707_p12 = pnand %p2706_p11, %p2888_p5 }
 0x2d8   : > { %p2714_p2 = por %p2713_p1, %p2712_p0 }
 0x2d9   : > { %p2708_p13 = pneg %p2707_p12 }
 0x2db   : > { %p2715_p3 = pnand %p2714_p2, %p2708_p13 }
 0x32a   : > { %v1475_v51 = vpop.permute.xlu0 %1474 }
 0x33b   : > { %v1483_v55 = vpop.permute.xlu1 %1482 }
 0x33c   : > { %v1502_v15 = vsel %vm1275_vm3, %v1450_v7, %v1483_v55  ;;  %v1680_v55 = vld [vmem:[%s3851_s7 + $0xc0] sm:$0xff]  ;;  %v2546_v7 = vpack.c.bf16 %v1697_v39, %v1696_v32  ;;  %v1671_v32 = vld [vmem:[%s3851_s7 + $0x78] sm:$0xff]  ;;  %v2529_v39 = vpack.c.bf16 %v1687_v48, %v1686_v45  ;;  %v1886_v45 = vld [vmem:[%s3853_s9 + $0x68] sm:$0xff] }
 0x33d   : > { %v1904_v48 = vld [vmem:[%s3853_s9 + $0xf8] sm:$0xff] }
 0x33e   : > { %v2692_v56 = vpop.permute.xlu0 %2691 }
 0x33f   : > { %v2693_v57 = vunpack.i.l.bf16 %v2692_v56  ;;  %v1491_v54 = vpop.permute.xlu1 %1490  ;;  %v2694_v59 = vunpack.i.h.bf16 %v2692_v56  ;;  %v1681_v56 = vld [vmem:[%s3851_s7 + $0xc8] sm:$0xff] }
 0x340   : > { %v1504_v11 = vsel %vm1285_vm4, %v1502_v15, %v1491_v54  ;;  %v1698_v15 = vld [vmem:[%s3851_s7 + $0x150] sm:$0xff] }
 0x341   : > { %2249 = vmatprep.mubr.msk.f32.mxu1 %vm1295_vm7, %v1504_v11  ;;  %v1496_v2 = vsel %vm1275_vm3, %v1442_v23, %v2693_v57  ;;  %v1497_v27 = vsel %vm1275_vm3, %v1443_v12, %v2694_v59  ;;  %v1699_v57 = vld [vmem:[%s3851_s7 + $0x158] sm:$0xff]  ;;  %v2517_v11 = vpack.c.bf16 %v1681_v56, %v1680_v55  ;;  %v1665_v59 = vld [vmem:[%s3851_s7 + $0x48] sm:$0xff] }
 0x342   : > { %v2697_v16 = vpop.permute.xlu0 %2696  ;;  %v1683_v23 = vld [vmem:[%s3851_s7 + $0xd8] sm:$0xff]  ;;  %v1685_v12 = vld [vmem:[%s3851_s7 + $0xe8] sm:$0xff] }
 0x343   : > { %v2698_v60 = vunpack.i.l.bf16 %v2697_v16  ;;  %v2699_v61 = vunpack.i.h.bf16 %v2697_v16  ;;  %v1485_v0 = vpop.permute.xlu1 %1484  ;;  %v1664_v16 = vld [vmem:[%s3851_s7 + $0x40] sm:$0xff] }
 0x344   : > { %v1503_v58 = vsel %vm1275_vm3, %v1451_v46, %v1485_v0  ;;  %v1700_v0 = vld [vmem:[%s3851_s7 + $0x160] sm:$0xff]  ;;  %v1701_v46 = vld [vmem:[%s3851_s7 + $0x168] sm:$0xff] }
 0x345   : > { %v1498_v3 = vsel %vm1285_vm4, %v1496_v2, %v2698_v60  ;;  %v1499_v10 = vsel %vm1285_vm4, %v1497_v27, %v2699_v61  ;;  %v1682_v60 = vld [vmem:[%s3851_s7 + $0xd0] sm:$0xff]  ;;  %v2549_v61 = vpack.c.bf16 %v1699_v57, %v1698_v15  ;;  %v2519_v2 = vpack.c.bf16 %v1665_v59, %v1664_v16 }
 0x346   : > { %v1493_v9 = vpop.permute.xlu0 %1492  ;;  %v1500_v8 = vsel %vm1295_vm7, %v1498_v3, %v1475_v51  ;;  %v1663_v51 = vld [vmem:[%s3851_s7 + $0x38] sm:$0xff]  ;;  %v1666_v3 = vld [vmem:[%s3851_s7 + $0x50] sm:$0xff] }
 0x347   : > { %v1505_v18 = vsel %vm1285_vm4, %v1503_v58, %v1493_v9  ;;  %1612 = vmatmul.mubr.f32.vlgmr.msra.gmra.mrb[0].mxu1 %v1500_v8  ;;  %v1477_v41 = vpop.permute.xlu1 %1476  ;;  %v2515_v54 = vpack.c.bf16 %v1663_v51, %v1662_v50  ;;  %v2521_v58 = vpack.c.bf16 %v1683_v23, %v1682_v60  ;;  %v1667_v9 = vld [vmem:[%s3851_s7 + $0x58] sm:$0xff]  ;;  %v1684_v8 = vld [vmem:[%s3851_s7 + $0xe0] sm:$0xff]  ;;  %v1702_v27 = vld [vmem:[%s3851_s7 + $0x170] sm:$0xff] }
 0x348   : > { %2250 = vmatprep.mubr.msk.f32.mxu1 %vm1295_vm7, %v1505_v18  ;;  %v1501_v63 = vsel %vm1295_vm7, %v1499_v10, %v1477_v41  ;;  %2535 = vmatpush1.bf16.msra.mxu1 %v2534_v17  ;;  %v2552_v18 = vpack.c.bf16 %v1701_v46, %v1700_v0  ;;  %v1703_v41 = vld [vmem:[%s3851_s7 + $0x178] sm:$0xff]  ;;  %v2523_v10 = vpack.c.bf16 %v1667_v9, %v1666_v3  ;;  %v1704_v17 = vld [vmem:[%s3851_s7 + $0x180] sm:$0xff]  ;;  %v1890_v46 = vld [vmem:[%s3853_s9 + $0x88] sm:$0xff] }
 0x349   : > { %2536 = vmatprep.subr.bf16.mxu1 %v2777_v6  ;;  %2516 = vmatpush3.bf16.msra.mxu0 %v2515_v54  ;;  %v2555_v13 = vpack.c.bf16 %v1703_v41, %v1702_v27  ;;  %v2558_v5 = vpack.c.bf16 %v1705_v25, %v1704_v17  ;;  %v1889_v0 = vld [vmem:[%s3853_s9 + $0x80] sm:$0xff]  ;;  %v1874_v3 = vld [vmem:[%s3853_s9 + $0x8] sm:$0xff]  ;;  %v1875_v27 = vld [vmem:[%s3853_s9 + $0x10] sm:$0xff] }
 0x34a   : > { %2518 = vmatprep.subr.bf16.mxu0 %v2517_v11  ;;  %v1876_v41 = vld [vmem:[%s3853_s9 + $0x18] sm:$0xff]  ;;  %v1878_v17 = vld [vmem:[%s3853_s9 + $0x28] sm:$0xff] }
 0x34b   : > { %1617 = vmatmul.mubr.f32.gmra.mrb[2].mxu1 %v1501_v63  ;;  %v2525_v63 = vpack.c.bf16 %v1685_v12, %v1684_v8  ;;  %v1891_v8 = vld [vmem:[%s3853_s9 + $0x90] sm:$0xff]  ;;  %v1892_v12 = vld [vmem:[%s3853_s9 + $0x98] sm:$0xff] }
 0x34c   : > { %2538 = vmatpush1.bf16.msra.mxu1 %v2537_v47  ;;  %v2527_v47 = vpack.c.bf16 %v1669_v29, %v1668_v24  ;;  %v1894_v24 = vld [vmem:[%s3853_s9 + $0xa8] sm:$0xff] }
 0x34d   : > { %2539 = vmatprep.subr.bf16.mxu1 %v2777_v6  ;;  %2520 = vmatpush3.bf16.msra.mxu0 %v2519_v2  ;;  %v1873_v2 = vld [vmem:[%s3853_s9] sm:$0xff] }
 0x34e   : > { %2522 = vmatprep.subr.bf16.mxu0 %v2521_v58  ;;  %v2569_v58 = vpack.c.bf16 %v1890_v46, %v1889_v0  ;;  %v2571_v9 = vpack.c.bf16 %v1874_v3, %v1873_v2  ;;  %v1905_v46 = vld [vmem:[%s3853_s9 + $0x100] sm:$0xff]  ;;  %v1906_v2 = vld [vmem:[%s3853_s9 + $0x108] sm:$0xff]  ;;  %v1924_v3 = vld [vmem:[%s3853_s9 + $0x198] sm:$0xff] }
 0x350   : > { %2541 = vmatpush1.bf16.msra.mxu1 %v2540_v14 }
 0x351   : > { %2542 = vmatprep.subr.bf16.mxu1 %v2777_v6  ;;  %2524 = vmatpush3.bf16.msra.mxu0 %v2523_v10  ;;  %v2575_v10 = vpack.c.bf16 %v1876_v41, %v1875_v27  ;;  %v1908_v41 = vld [vmem:[%s3853_s9 + $0x118] sm:$0xff] }
 0x352   : > { %2526 = vmatprep.subr.bf16.mxu0 %v2525_v63  ;;  %v1893_v63 = vld [vmem:[%s3853_s9 + $0xa0] sm:$0xff] }
 0x353   : > { %v2577_v29 = vpack.c.bf16 %v1894_v24, %v1893_v63  ;;  %v1926_v63 = vld [vmem:[%s3853_s9 + $0x1a8] sm:$0xff] }
 0x354   : > { %2544 = vmatpush1.bf16.msra.mxu1 %v2543_v49  ;;  %v1670_v49 = vld [vmem:[%s3851_s7 + $0x70] sm:$0xff] }
 0x355   : > { %2545 = vmatprep.subr.bf16.mxu1 %v2777_v6  ;;  %2528 = vmatpush3.bf16.msra.mxu0 %v2527_v47  ;;  %v2531_v40 = vpack.c.bf16 %v1671_v32, %v1670_v49  ;;  %v1895_v47 = vld [vmem:[%s3853_s9 + $0xb0] sm:$0xff] }
 0x356   : > { %2530 = vmatprep.subr.bf16.mxu0 %v2529_v39  ;;  %v1887_v39 = vld [vmem:[%s3853_s9 + $0x70] sm:$0xff] }
 0x358   : > { %2547 = vmatpush1.bf16.msra.mxu1 %v2546_v7 }
 0x359   : > { %2548 = vmatprep.subr.bf16.mxu1 %v2777_v6  ;;  %2532 = vmatpush3.bf16.msra.mxu0 %v2531_v40  ;;  %v1888_v40 = vld [vmem:[%s3853_s9 + $0x78] sm:$0xff] }
 0x35a   : > { %2570 = vmatprep.subr.bf16.mxu0 %v2569_v58  ;;  %v1923_v58 = vld [vmem:[%s3853_s9 + $0x190] sm:$0xff] }
 0x35b   : > { %v2605_v27 = vpack.c.bf16 %v1924_v3, %v1923_v58 }
 0x35c   : > { %2550 = vmatpush1.bf16.msra.mxu1 %v2549_v61 }
 0x35d   : > { %2551 = vmatprep.subr.bf16.mxu1 %v2777_v6 }
 0x360   : > { %2553 = vmatpush1.bf16.msra.mxu1 %v2552_v18  ;;  %v2573_v18 = vpack.c.bf16 %v1892_v12, %v1891_v8  ;;  %v1907_v8 = vld [vmem:[%s3853_s9 + $0x110] sm:$0xff] }
 0x361   : > { %2554 = vmatprep.subr.bf16.mxu1 %v2777_v6 }
 0x364   : > { %2556 = vmatpush1.bf16.msra.mxu1 %v2555_v13  ;;  %v1877_v13 = vld [vmem:[%s3853_s9 + $0x20] sm:$0xff] }
 0x365   : > { %2557 = vmatprep.subr.bf16.mxu1 %v2777_v6  ;;  %v2579_v25 = vpack.c.bf16 %v1878_v17, %v1877_v13  ;;  %v1909_v17 = vld [vmem:[%s3853_s9 + $0x120] sm:$0xff] }
 0x368   : > { %2559 = vmatpush1.bf16.msra.mxu1 %v2558_v5  ;;  %v1896_v5 = vld [vmem:[%s3853_s9 + $0xb8] sm:$0xff] }
 0x369   : > { %2560 = vmatprep.subr.bf16.mxu1 %v2777_v6  ;;  %v2581_v19 = vpack.c.bf16 %v1896_v5, %v1895_v47  ;;  %v1927_v47 = vld [vmem:[%s3853_s9 + $0x1b0] sm:$0xff]  ;;  %v1928_v5 = vld [vmem:[%s3853_s9 + $0x1b8] sm:$0xff] }
 0x36c   : > { %2562 = vmatpush1.bf16.msra.mxu1 %v2561_v52  ;;  %v1880_v52 = vld [vmem:[%s3853_s9 + $0x38] sm:$0xff] }
 0x36d   : > { %2563 = vmatprep.subr.bf16.mxu1 %v2777_v6  ;;  %v2583_v28 = vpack.c.bf16 %v1880_v52, %v1879_v26  ;;  %v2613_v26 = vpack.c.bf16 %v1928_v5, %v1927_v47  ;;  %v1911_v52 = vld [vmem:[%s3853_s9 + $0x130] sm:$0xff] }
 0x370   : > { %2565 = vmatpush1.bf16.msra.mxu1 %v2564_v31  ;;  %v1898_v31 = vld [vmem:[%s3853_s9 + $0xc8] sm:$0xff] }
 0x371   : > { %2566 = vmatprep.subr.bf16.mxu1 %v2777_v6  ;;  %v2585_v62 = vpack.c.bf16 %v1898_v31, %v1897_v4  ;;  %v1929_v4 = vld [vmem:[%s3853_s9 + $0x1c0] sm:$0xff]  ;;  %v1930_v31 = vld [vmem:[%s3853_s9 + $0x1c8] sm:$0xff] }
 0x374   : > { %2568 = vmatpush1.bf16.msra.mxu1 %v2567_v37  ;;  %v1882_v37 = vld [vmem:[%s3853_s9 + $0x48] sm:$0xff] }
 0x375   : > { %2633 = vmatprep.subr.bf16.mxu1 %v2777_v6 }
 0x41a   : > { %v1613_v38 = vpop.f32.mrb[0].mxu1 }
 0x41b   : > { %v1614_v14 = vadd.f32 %v2248_v20, %v1613_v38  ;;  %v1615_v42 = vpop.f32.mrb[1].mxu1  ;;  %v1900_v38 = vld [vmem:[%s3853_s9 + $0xd8] sm:$0xff] }
 0x41d   : > { %v1622_v30 = vmax.f32 %v1614_v14, 0.0  ;;  %v2587_v14 = vpack.c.bf16 %v1882_v37, %v1881_v35  ;;  %v1913_v37 = vld [vmem:[%s3853_s9 + $0x140] sm:$0xff] }
 0x41e   : > { %v1618_v33 = vpop.f32.mrb[2].mxu1 }
 0x41f   : > { %1624 = vst.msk [vmem:[#allocation7] sm:$0xff] %vm1285_vm4, %v1622_v30  ;;  %v1619_v43 = vadd.f32 %v2248_v20, %v1618_v33  ;;  %v1620_v34 = vpop.f32.mrb[3].mxu1  ;;  %v1899_v20 = vld [vmem:[%s3853_s9 + $0xd0] sm:$0xff]  ;;  %v1884_v33 = vld [vmem:[%s3853_s9 + $0x58] sm:$0xff] }
 0x420   : > { %v2589_v42 = vpack.c.bf16 %v1900_v38, %v1899_v20  ;;  %v1883_v30 = vld [vmem:[%s3853_s9 + $0x50] sm:$0xff]  ;;  %v1902_v34 = vld [vmem:[%s3853_s9 + $0xe8] sm:$0xff] }
 0x421   : > { %v1623_v44 = vmax.f32 %v1619_v43, 0.0  ;;  %v1901_v43 = vld [vmem:[%s3853_s9 + $0xe0] sm:$0xff]  ;;  %v1914_v20 = vld [vmem:[%s3853_s9 + $0x148] sm:$0xff]  ;;  %v1931_v38 = vld [vmem:[%s3853_s9 + $0x1d0] sm:$0xff] }
 0x423   : > { %1625 = vst.msk [vmem:[#allocation7 + $0x8] sm:$0xff] %vm1285_vm4, %v1623_v44  ;;  %v2591_v44 = vpack.c.bf16 %v1884_v33, %v1883_v30  ;;  %v1915_v33 = vld [vmem:[%s3853_s9 + $0x150] sm:$0xff] }
 0x42a   : > { %v1626_v53 = vld [vmem:[#allocation7] ss:$2 sm:$0xff]  ;;  %v1628_v22 = vld [vmem:[#allocation7 + $0x1] ss:$2 sm:$0xff] }
 0x42b   : > { %v1629_v21 = vmax.f32 %v1626_v53, %v1628_v22  ;;  %v2593_v53 = vpack.c.bf16 %v1902_v34, %v1901_v43  ;;  %v1885_v22 = vld [vmem:[%s3853_s9 + $0x60] sm:$0xff]  ;;  %v1916_v43 = vld [vmem:[%s3853_s9 + $0x158] sm:$0xff] }
 0x42c   : > { %v2595_v49 = vpack.c.bf16 %v1886_v45, %v1885_v22  ;;  %v1933_v34 = vld [vmem:[%s3853_s9 + $0x1e0] sm:$0xff] }
 0x42d   : > { %1633 = vst.msk [vmem:[#allocation8 + $0x3] sm:$0xff] %vm1285_vm4, %v1629_v21  ;;  %v1903_v21 = vld [vmem:[%s3853_s9 + $0xf0] sm:$0xff]  ;;  %v1917_v45 = vld [vmem:[%s3853_s9 + $0x160] sm:$0xff] }
 0x42e   : > { %v2597_v32 = vpack.c.bf16 %v1904_v48, %v1903_v21  ;;  %v1918_v21 = vld [vmem:[%s3853_s9 + $0x168] sm:$0xff]  ;;  %v1935_v48 = vld [vmem:[%s3853_s9 + $0x1f0] sm:$0xff] }
 0x434   : > { %v1640_v36 = vld [vmem:[#allocation8 + $0x6] sm:$0xff] }
 0x435   : > { %v1639_v50 = vld [vmem:[#allocation8 + $0x5] sm:$0xff]  ;;  %2252 = vmatprep.mubr.msk.f32.mxu1 %vm1285_vm4, %v1640_v36  ;;  %v2599_v36 = vpack.c.bf16 %v1888_v40, %v1887_v39  ;;  %v1919_v40 = vld [vmem:[%s3853_s9 + $0x170] sm:$0xff] }
 0x436   : > { %v1635_v51 = vld [vmem:[#allocation8 + $0x1] sm:$0xff]  ;;  %1650 = vrot.lane.b32.xlu1 %v1639_v50, %s3882_s22 }
 0x437   : > { %v1637_v55 = vld [vmem:[#allocation8 + $0x3] sm:$0xff] }
 0x438   : > { %v2700_v56 = vpack.i.bf16 %v1635_v51, %v1637_v55  ;;  %v1638_v15 = vld [vmem:[#allocation8 + $0x4] sm:$0xff] }
 0x439   : > { %v1634_v59 = vld [vmem:[#allocation8] sm:$0xff]  ;;  %v1922_v51 = vld [vmem:[%s3853_s9 + $0x188] sm:$0xff] }
 0x43a   : > { %2701 = vrot.lane.b32.xlu0 %v2700_v56, %s3882_s22  ;;  %v1636_v60 = vld [vmem:[#allocation8 + $0x2] sm:$0xff] }
 0x43b   : > { %v1921_v50 = vld [vmem:[%s3853_s9 + $0x180] sm:$0xff] }
 0x43c   : > { %v2601_v55 = vpack.c.bf16 %v1922_v51, %v1921_v50 }
 0x4a8   : > { %v1651_v7 = vpop.permute.xlu1 %1650 }
 0x4a9   : > { %v1655_v57 = vsel %vm1285_vm4, %v1638_v15, %v1651_v7 }
 0x4aa   : > { %1857 = vmatmul.mubr.f32.vlgmr.msra.gmra.mrb[4].mxu1 %v1655_v57  ;;  %v2251_v57 = vld [vmem:[%s3852_s8] ss:$0 sm:$0xff] }
 0x4ab   : > { %2428 = vmatprep.mubr.msk.f32.mxu1 %vm2778_vm11, %v2770_v1  ;;  %v2083_v1 = vld [vmem:[%s3856_s12] sm:$0x1] }
 0x4ac   : > { %v2702_v54 = vpop.permute.xlu0 %2701 }
 0x4ad   : > { %v2704_v11 = vunpack.i.h.bf16 %v2702_v54  ;;  %v2703_v16 = vunpack.i.l.bf16 %v2702_v54 }
 0x4af   : > { %v1653_v23 = vsel %vm1285_vm4, %v1634_v59, %v2704_v11  ;;  %v1654_v61 = vsel %vm1285_vm4, %v1636_v60, %v2703_v16 }
 0x4b0   : > { %1786 = vmatprep.mubr.f32.mxu0 %v1654_v61 }
 0x4b1   : > { %1787 = vmatmul.mubr.f32.vlgmr.msra.gmra.mrb[4].mxu0 %v1653_v23 }
 0x4b2   : > { %2572 = vmatpush3.bf16.msra.mxu0 %v2571_v9  ;;  %v2603_v9 = vpack.c.bf16 %v1906_v2, %v1905_v46 }
 0x4b3   : > { %2574 = vmatprep.subr.bf16.mxu0 %v2573_v18 }
 0x4b6   : > { %2576 = vmatpush3.bf16.msra.mxu0 %v2575_v10  ;;  %v1925_v10 = vld [vmem:[%s3853_s9 + $0x1a0] sm:$0xff] }
 0x4b7   : > { %2578 = vmatprep.subr.bf16.mxu0 %v2577_v29  ;;  %v2607_v29 = vpack.c.bf16 %v1908_v41, %v1907_v8  ;;  %v2609_v13 = vpack.c.bf16 %v1926_v63, %v1925_v10 }
 0x4ba   : > { %2580 = vmatpush3.bf16.msra.mxu0 %v2579_v25  ;;  %v1910_v25 = vld [vmem:[%s3853_s9 + $0x128] sm:$0xff] }
 0x4bb   : > { %2582 = vmatprep.subr.bf16.mxu0 %v2581_v19  ;;  %v2611_v19 = vpack.c.bf16 %v1910_v25, %v1909_v17 }
 0x4be   : > { %2584 = vmatpush3.bf16.msra.mxu0 %v2583_v28  ;;  %v1912_v28 = vld [vmem:[%s3853_s9 + $0x138] sm:$0xff] }
 0x4bf   : > { %2586 = vmatprep.subr.bf16.mxu0 %v2585_v62  ;;  %v2615_v35 = vpack.c.bf16 %v1912_v28, %v1911_v52  ;;  %v2617_v62 = vpack.c.bf16 %v1930_v31, %v1929_v4 }
 0x4c2   : > { %2588 = vmatpush3.bf16.msra.mxu0 %v2587_v14  ;;  %v1932_v14 = vld [vmem:[%s3853_s9 + $0x1d8] sm:$0xff] }
 0x4c3   : > { %2590 = vmatprep.subr.bf16.mxu0 %v2589_v42  ;;  %v2619_v42 = vpack.c.bf16 %v1914_v20, %v1913_v37  ;;  %v2621_v30 = vpack.c.bf16 %v1932_v14, %v1931_v38 }
 0x4c6   : > { %2592 = vmatpush3.bf16.msra.mxu0 %v2591_v44  ;;  %v1934_v44 = vld [vmem:[%s3853_s9 + $0x1e8] sm:$0xff] }
 0x4c7   : > { %2594 = vmatprep.subr.bf16.mxu0 %v2593_v53  ;;  %v2623_v53 = vpack.c.bf16 %v1916_v43, %v1915_v33  ;;  %v2625_v22 = vpack.c.bf16 %v1934_v44, %v1933_v34 }
 0x4ca   : > { %2596 = vmatpush3.bf16.msra.mxu0 %v2595_v49  ;;  %v1936_v49 = vld [vmem:[%s3853_s9 + $0x1f8] sm:$0xff] }
 0x4cb   : > { %2598 = vmatprep.subr.bf16.mxu0 %v2597_v32  ;;  %v2627_v32 = vpack.c.bf16 %v1918_v21, %v1917_v45  ;;  %v2629_v39 = vpack.c.bf16 %v1936_v49, %v1935_v48 }
 0x4ce   : > { %2600 = vmatpush3.bf16.msra.mxu0 %v2599_v36  ;;  %v1920_v36 = vld [vmem:[%s3853_s9 + $0x178] sm:$0xff] }
 0x4cf   : > { %2602 = vmatprep.subr.bf16.mxu0 %v2601_v55  ;;  %v2631_v50 = vpack.c.bf16 %v1920_v36, %v1919_v40  ;;  %v2079_v55 = vld [vmem:[%s3855_s11] sm:$0xff] }
 0x57d   : > { %v1858_v56 = vpop.f32.mrb[4].mxu1 }
 0x57e   : > { %v1860_v7 = vpop.f32.mrb[5].mxu1 }
 0x584   : > { %v2308_v15 = vpop.f32.mrb[4].mxu0 }
 0x585   : > { %v2309_v54 = vpop.f32.mrb[5].mxu0 }
 0x586   : > { %v2310_v11 = vadd.f32 %v2309_v54, %v2308_v15  ;;  %v2081_v15 = vld [vmem:[%s3855_s11 + $0x10] sm:$0xff] }
 0x588   : > { %v1789_v16 = vadd.f32 %v2310_v11, %v2251_v57  ;;  %v2082_v57 = vld [vmem:[%s3855_s11 + $0x18] sm:$0xff] }
 0x589   : > { %v2637_v54 = vpack.c.bf16 %v2082_v57, %v2081_v15 }
 0x58a   : > { %v1859_v59 = vadd.f32 %v1858_v56, %v1789_v16  ;;  %v2080_v56 = vld [vmem:[%s3855_s11 + $0x8] sm:$0xff] }
 0x58b   : > { %v2634_v7 = vpack.c.bf16 %v2080_v56, %v2079_v55 }
 0x58c   : > { %v1862_v60 = vmax.f32 %v1859_v59, 0.0 }
 0x58d   : > { %2635 = vmatpush3.bf16.msra.mxu1 %v2634_v7 }
 0x58e   : > { %1863 = vst [vmem:[#allocation9] sm:$0xff] %v1862_v60  ;;  %2636 = vmatprep.subr.bf16.mxu1 %v2777_v6  ;;  %v1937_v6 = vld [vmem:[%s3854_s10] sm:$0x1] }
 0x591   : > { %2638 = vmatpush3.bf16.msra.mxu1 %v2637_v54 }
 0x595   : > { %v1864_v23 = vld [vmem:[#allocation9] ss:$2 sm:$0xf]  ;;  %v1866_v61 = vld [vmem:[#allocation9 + $0x1] ss:$2 sm:$0xf] }
 0x596   : > { %v1867_v0 = vmax.f32 %v1864_v23, %v1866_v61 }
 0x598   : > { %1868 = vst [vmem:[#allocation10] sm:$0xf] %v1867_v0 }
 0x59f   : > { %v1870_v12 = vld [vmem:[#allocation10 + $0x1] sm:$0x1]  ;;  %v1869_v18 = vld [vmem:[#allocation10] sm:$0x1]  ;;  %v1872_v24 = vld [vmem:[#allocation10 + $0x3] sm:$0x1] }
 0x5a0   : > { %2002 = vmatprep.mubr.f32.mxu0 %v1870_v12  ;;  %v1871_v51 = vld [vmem:[#allocation10 + $0x2] sm:$0x1] }
 0x5a1   : > { %2003 = vmatmul.mubr.f32.vlgmr.msra.gmra.mrb[6].mxu0 %v1869_v18 }
 0x5a2   : > { %2604 = vmatpush3.bf16.msra.mxu0 %v2603_v9  ;;  %2072 = vmatprep.mubr.f32.mxu0 %v1872_v24 }
 0x5a3   : > { %2606 = vmatprep.subr.bf16.mxu0 %v2605_v27 }
 0x5a6   : > { %2608 = vmatpush3.bf16.msra.mxu0 %v2607_v29 }
 0x5a7   : > { %2610 = vmatprep.subr.bf16.mxu0 %v2609_v13 }
 0x5aa   : > { %2612 = vmatpush3.bf16.msra.mxu0 %v2611_v19 }
 0x5ab   : > { %2614 = vmatprep.subr.bf16.mxu0 %v2613_v26 }
 0x5ae   : > { %2616 = vmatpush3.bf16.msra.mxu0 %v2615_v35 }
 0x5af   : > { %2618 = vmatprep.subr.bf16.mxu0 %v2617_v62 }
 0x5b2   : > { %2620 = vmatpush3.bf16.msra.mxu0 %v2619_v42 }
 0x5b3   : > { %2622 = vmatprep.subr.bf16.mxu0 %v2621_v30 }
 0x5b6   : > { %2624 = vmatpush3.bf16.msra.mxu0 %v2623_v53 }
 0x5b7   : > { %2626 = vmatprep.subr.bf16.mxu0 %v2625_v22 }
 0x5ba   : > { %2628 = vmatpush3.bf16.msra.mxu0 %v2627_v32 }
 0x5bb   : > { %2630 = vmatprep.subr.bf16.mxu0 %v2629_v39 }
 0x5be   : > { %2632 = vmatpush3.bf16.msra.mxu0 %v2631_v50 }
 0x5c1   : > { %2073 = vmatmul.mubr.f32.vlgmr.msra.gmra.mrb[8].mxu0 %v1871_v51 }
 0x674   : > { %v2343_v11 = vpop.f32.mrb[6].mxu0 }
 0x675   : > { %v2344_v16 = vpop.f32.mrb[7].mxu0 }
 0x676   : > { %v2345_v59 = vadd.f32 %v2344_v16, %v2343_v11 }
 0x678   : > { %v2005_v61 = vadd.f32 %v2345_v59, %v1937_v6 }
 0x694   : > { %v2378_v60 = vpop.f32.mrb[8].mxu0 }
 0x695   : > { %v2379_v23 = vpop.f32.mrb[9].mxu0 }
 0x696   : > { %v2380_v0 = vadd.f32 %v2379_v23, %v2378_v60 }
 0x698   : > { %v2075_v46 = vadd.f32 %v2380_v0, %v2005_v61 }
 0x69a   : > { %v2078_v2 = vmax.f32 %v2075_v46, 0.0 }
 0x69c   : > { %2429 = vmatmul.mubr.msk.f32.vlgmr.msra.gmra.mrb[6].mxu1 %vm1275_vm3, %v2078_v2 }
 0x76f   : > { %v2153_v58 = vpop.f32.mrb[6].mxu1 }
 0x770   : > { %v2154_v3 = vadd.f32 %v2153_v58, %v2083_v1  ;;  %v2430_v9 = vpop.f32.mrb[7].mxu1 }
 0x772   : > { %2158 = vst.msk [vmem:[%s432_s0] sm:$0x1] %vm2157_vm12, %v2154_v3 }
 0x773   : > { %2718 = shalt.err (!%p2715_p3)
}
 0x774   : > { %s2719_s21 = scalar_lea.hbm %s3802_s2, 16  ;;  %s2723_s0 = scalar_lea.hbm %s3857_s13, 32 }
 0x775   : > { %p2720_p4 = scmp.ne.s32.totalorder %s3802_s2, %s2719_s21  ;;  %p2724_p9 = scmp.lt.u32.totalorder %s3802_s2, %s3857_s13 }
 0x776   : > { %p2725_p10 = scmp.lt.u32.totalorder %s2723_s0, %s2719_s21  ;;  %p2727_p12 = scmp.lt.u32.totalorder %s2719_s21, %s3802_s2 }
 0x777   : > { %p2721_p7 = pnand %p2720_p4, %p2888_p5 }
 0x778   : > { %p2726_p11 = por %p2725_p10, %p2724_p9 }
 0x779   : > { %p2722_p8 = pneg %p2721_p7 }
 0x77a   : > { %p2728_p13 = por %p2727_p12, %p2726_p11 }
 0x77c   : > { %p2729_p0 = pnand %p2728_p13, %p2722_p8 }
 0x77e   : > { %2732 = shalt.err (!%p2729_p0)
}
 0x77f   : > { %2639 = dma.vmem_to_hbm [thread:$0]  (%p2888_p5), %s3804_s15, 16, %s3802_s2, %s2160_s24  }
 0x780 PF: > { %p2645_p1 = scmp.ge.s32.totalorder %s2767_s28, 2  ;;  %s2184_s3 = sand.u32 1, %s2755_s25  }
 0x781   : > { %s2185_s29 = scalar_lea.sflag [#allocation12], %s2184_s3 }
 0x782   : > { %p2642_p2 = pnand %p2645_p1, %p2892_p6 }
 0x784   : > { %2750 = dma.done.wait (!%p2642_p2), %s2185_s29, 16  }
 0x785   : > { %2752 = vsyncadd (!%p2642_p2), %s2185_s29, 4294967280  ;;  %p23_p3 = scmp.ge.s32.totalorder %s2875_s14, 4   ;;  %s3883_s25 = smov %s2759_s26 }
 0x786   : > { %s3884_s26 = smov %s2763_s27  ;;  %s3885_s27 = smov %s2886_s17 }
 0x787   : > { %s3886_s28 = smov %s2875_s14  ;;  %25 = sbr.rel (!%p23_p3) target bundleno = 8 (0x8), region = 119 }
 0x78e   :  { %2189 = vsyncpa [#allocation12], 1 }
 0x78f   :  { %2191 = vsyncpa [#allocation12 + $0x1], 1 }

</bundles_post_ra>
